<compile_context>
chip_gen: v6e
topology: v6e:2x2x1
jax: 0.10.0
libtpu: 0.0.40
codegen_flags: <defaults>
</compile_context>

<pallas_src>
import jax
import jax.numpy as jnp
from jax import lax
from jax.experimental import pallas as pl
from jax.experimental.pallas import tpu as pltpu


# ----------------------------------------------------------------------------
# Pallas kernel: serial bidirectional LSTM recurrence (only the truly serial
# part lives in the kernel; the hoisted input projection is done once in the
# wrapper). Everything is VMEM-resident at these sizes, single grid point.
# ----------------------------------------------------------------------------
def bilstm_kernel(gx_ref, whh_f_ref, whh_b_ref, out_ref):
    """gx_ref : (T, B, 8H) precomputed input gates,
                columns = [fwd i|f|o|g | bwd i|f|o|g] (reordered gate layout)
       whh_*  : (H, 4H) recurrent weights, same reordered gate layout
       out_ref: (T, B, 2H), [..., :H] forward hidden, [..., H:] backward hidden
    """
    T, B, _ = gx_ref.shape
    H = whh_f_ref.shape[0]
    G = 4 * H

    # Weights read once, stay in vregs/VMEM values across the loop.
    whh_f = whh_f_ref[...]
    whh_b = whh_b_ref[...]

    def cell(gates, c):
        # gate columns (reordered): [i | f | o | g]
        sig = jax.nn.sigmoid(gates[:, : 3 * H])   # one EUP push: i, f, o
        g = jnp.tanh(gates[:, 3 * H:])            # one EUP push: g
        c_new = sig[:, H:2 * H] * c + sig[:, :H] * g
        h_new = sig[:, 2 * H:3 * H] * jnp.tanh(c_new)
        return h_new, c_new

    def step(i, carry):
        hf, cf, hb, cb = carry
        tb = T - 1 - i
        gx_f = gx_ref[i]       # (B, 8H)
        gx_b = gx_ref[tb]      # (B, 8H)
        # Only the recurrent h @ W_hh matmul remains on the serial path.
        gates_f = gx_f[:, :G] + jnp.dot(hf, whh_f,
                                        preferred_element_type=jnp.float32)
        gates_b = gx_b[:, G:] + jnp.dot(hb, whh_b,
                                        preferred_element_type=jnp.float32)
        hf, cf = cell(gates_f, cf)
        hb, cb = cell(gates_b, cb)
        out_ref[i, :, pl.ds(0, H)] = hf.astype(out_ref.dtype)
        out_ref[tb, :, pl.ds(H, H)] = hb.astype(out_ref.dtype)
        return hf, cf, hb, cb

    z = jnp.zeros((B, H), jnp.float32)
    # T is static and small here -> full unroll so MXU push / EUP / store of
    # step i overlap step i+1. TODO(synk): for large T, unroll by a fixed
    # factor and tile T with a grid axis + VMEM-scratch (h, c) carry instead.
    lax.fori_loop(0, T, step, (z, z, z, z), unroll=True)


# ----------------------------------------------------------------------------
# Wrapper: embedding gather, gate reorder, hoisted input projection, layout.
# ----------------------------------------------------------------------------
def _reorder_gates(w, H):
    # PyTorch gate order (i, f, g, o) -> (i, f, o, g) along the last axis so
    # all sigmoid gates are contiguous inside the kernel.
    return jnp.concatenate(
        [w[..., :2 * H], w[..., 3 * H:], w[..., 2 * H:3 * H]], axis=-1)


def encoder_forward(input_ids, params):
    """input_ids: (B, T) int32 -> enc_rep: (B, T, 2H) float32 (eval mode)."""
    # TODO(synk): dropout is identity in eval mode; training-mode dropout
    # (stateful pltpu.prng_* masking) intentionally not implemented.
    # TODO(synk): for large vocab / long sequences, move the gather into the
    # Pallas pipeline (PrefetchScalarGridSpec) and tile over T; on v7x the two
    # directions could additionally be sharded across the two TensorCores.
    emb = jnp.take(params["embedding"], input_ids, axis=0)        # (B, T, E)
    B, T, E = emb.shape
    H = params["whh_f"].shape[0]

    wih = jnp.concatenate([_reorder_gates(params["wih_f"], H),
                           _reorder_gates(params["wih_b"], H)], axis=-1)   # (E, 8H)
    bias = jnp.concatenate([_reorder_gates(params["b_f"], H),
                            _reorder_gates(params["b_b"], H)], axis=-1)    # (1, 8H)
    whh_f = _reorder_gates(params["whh_f"], H)                             # (H, 4H)
    whh_b = _reorder_gates(params["whh_b"], H)                             # (H, 4H)

    # Hoisted input projection: one matmul for the whole sequence and both
    # directions; einsum emits the time-major layout directly (no transpose).
    gx = jnp.einsum("bte,eg->tbg", emb.astype(jnp.float32), wih,
                    precision="highest") + bias                   # (T, B, 8H)

    vmem = pl.BlockSpec(memory_space=pltpu.MemorySpace.VMEM)
    out = pl.pallas_call(
        bilstm_kernel,
        out_shape=jax.ShapeDtypeStruct((T, B, 2 * H), jnp.float32),
        in_specs=[vmem, vmem, vmem],
        out_specs=vmem,
    )(gx, whh_f, whh_b)                                            # (T, B, 2H)

    return jnp.transpose(out, (1, 0, 2))                           # (B, T, 2H)


# ----------------------------------------------------------------------------
# Pure-JAX reference (PyTorch gate order, per-step matmuls) for sanity check.
# ----------------------------------------------------------------------------
def lstm_direction_ref(x, wih, whh, b, reverse):
    T, B, E = x.shape
    H = whh.shape[0]
    xs = x[::-1] if reverse else x

    def step(carry, x_t):
        h, c = carry
        gates = x_t @ wih + h @ whh + b
        i_g = jax.nn.sigmoid(gates[:, :H])
        f_g = jax.nn.sigmoid(gates[:, H:2 * H])
        g_g = jnp.tanh(gates[:, 2 * H:3 * H])
        o_g = jax.nn.sigmoid(gates[:, 3 * H:])
        c = f_g * c + i_g * g_g
        h = o_g * jnp.tanh(c)
        return (h, c), h

    (_, _), hs = lax.scan(step, (jnp.zeros((B, H)), jnp.zeros((B, H))), xs)
    return hs[::-1] if reverse else hs


def encoder_ref(input_ids, params):
    emb = jnp.take(params["embedding"], input_ids, axis=0)
    x = jnp.transpose(emb, (1, 0, 2)).astype(jnp.float32)
    hf = lstm_direction_ref(x, params["wih_f"], params["whh_f"], params["b_f"], False)
    hb = lstm_direction_ref(x, params["wih_b"], params["whh_b"], params["b_b"], True)
    return jnp.transpose(jnp.concatenate([hf, hb], axis=-1), (1, 0, 2))


# ----------------------------------------------------------------------------
# Deterministic parameter construction (PyTorch-style uniform(-1/sqrt(H), .)).
# Stored pre-transposed for right-multiplication, PyTorch gate order i,f,g,o:
# wih (E, 4H), whh (H, 4H), combined bias (b_ih + b_hh) as (1, 4H).
# ----------------------------------------------------------------------------
def make_params(key, vocab_size, embed_dim, hidden_dim):
    keys = jax.random.split(key, 9)
    k = 1.0 / jnp.sqrt(hidden_dim)
    u = lambda kk, shape: jax.random.uniform(kk, shape, jnp.float32, -k, k)
    return {
        "embedding": jax.random.normal(keys[0], (vocab_size, embed_dim), jnp.float32),
        "wih_f": u(keys[1], (embed_dim, 4 * hidden_dim)),
        "whh_f": u(keys[2], (hidden_dim, 4 * hidden_dim)),
        "b_f":   u(keys[3], (1, 4 * hidden_dim)) + u(keys[4], (1, 4 * hidden_dim)),
        "wih_b": u(keys[5], (embed_dim, 4 * hidden_dim)),
        "whh_b": u(keys[6], (hidden_dim, 4 * hidden_dim)),
        "b_b":   u(keys[7], (1, 4 * hidden_dim)) + u(keys[8], (1, 4 * hidden_dim)),
    }


if __name__ == "__main__":
    B, T = 2, 8
    VOCAB, EMBED, HIDDEN = 50, 32, 32

    key = jax.random.PRNGKey(0)
    k_ids, k_params = jax.random.split(key)
    params = make_params(k_params, VOCAB, EMBED, HIDDEN)
    input_ids = jax.random.randint(k_ids, (B, T), 0, VOCAB, dtype=jnp.int32)

    enc_rep = jax.jit(encoder_forward)(input_ids, params)
    enc_rep = jax.block_until_ready(enc_rep)
    assert enc_rep.shape == (B, T, 2 * HIDDEN), enc_rep.shape

    ref = encoder_ref(input_ids, params)
    err = float(jnp.max(jnp.abs(enc_rep - ref)))
    assert err < 5e-4, f"mismatch vs reference: {err}"

    print("KERNEL_OK")
</pallas_src>

<mosaic_0001>
module attributes {stable_mosaic.version = 11 : i64} {
  func.func @bilstm_kernel(%arg0: memref<8x2x256xf32, #tpu.memory_space<vmem>>, %arg1: memref<32x128xf32, #tpu.memory_space<vmem>>, %arg2: memref<32x128xf32, #tpu.memory_space<vmem>>, %arg3: memref<8x2x64xf32, #tpu.memory_space<vmem>>) attributes {dimension_semantics = [], scalar_prefetch = 0 : i64, scratch_operands = 0 : i64, tpu.core_type = #tpu.core_type<tc>} {
    %c0 = arith.constant 0 : index
    %c0_0 = arith.constant 0 : index
    %0 = vector.load %arg1[%c0, %c0_0] : memref<32x128xf32, #tpu.memory_space<vmem>>, vector<32x128xf32>
    %c0_1 = arith.constant 0 : index
    %c0_2 = arith.constant 0 : index
    %1 = vector.load %arg2[%c0_1, %c0_2] : memref<32x128xf32, #tpu.memory_space<vmem>>, vector<32x128xf32>
    %cst = arith.constant 0.000000e+00 : f32
    %2 = vector.broadcast %cst : f32 to vector<2x32xf32>
    %c0_i32 = arith.constant 0 : i32
    %c7_i32 = arith.constant 7 : i32
    %3 = arith.subi %c7_i32, %c0_i32 : i32
    %4 = arith.index_cast %c0_i32 : i32 to index
    %c0_3 = arith.constant 0 : index
    %c0_4 = arith.constant 0 : index
    %5 = vector.load %arg0[%4, %c0_3, %c0_4] : memref<8x2x256xf32, #tpu.memory_space<vmem>>, vector<1x2x256xf32>
    %6 = vector.shape_cast %5 : vector<1x2x256xf32> to vector<2x256xf32>
    %7 = arith.index_cast %3 : i32 to index
    %c0_5 = arith.constant 0 : index
    %c0_6 = arith.constant 0 : index
    %8 = vector.load %arg0[%7, %c0_5, %c0_6] : memref<8x2x256xf32, #tpu.memory_space<vmem>>, vector<1x2x256xf32>
    %9 = vector.shape_cast %8 : vector<1x2x256xf32> to vector<2x256xf32>
    %10 = vector.extract_strided_slice %6 {offsets = [0, 0], sizes = [2, 128], strides = [1, 1]} : vector<2x256xf32> to vector<2x128xf32>
    %cst_7 = arith.constant dense<0.000000e+00> : vector<2x128xf32>
    %11 = tpu.matmul %2, %0, %cst_7 {dimension_numbers = #tpu.dot_dimension_numbers<[1], [0], [0], [1], [0, 0, 1, 1], [], []>} : vector<2x32xf32>, vector<32x128xf32>, vector<2x128xf32> -> vector<2x128xf32>
    %12 = arith.addf %10, %11 : vector<2x128xf32>
    %13 = vector.extract_strided_slice %9 {offsets = [0, 128], sizes = [2, 128], strides = [1, 1]} : vector<2x256xf32> to vector<2x128xf32>
    %cst_8 = arith.constant dense<0.000000e+00> : vector<2x128xf32>
    %14 = tpu.matmul %2, %1, %cst_8 {dimension_numbers = #tpu.dot_dimension_numbers<[1], [0], [0], [1], [0, 0, 1, 1], [], []>} : vector<2x32xf32>, vector<32x128xf32>, vector<2x128xf32> -> vector<2x128xf32>
    %15 = arith.addf %13, %14 : vector<2x128xf32>
    %16 = vector.extract_strided_slice %12 {offsets = [0, 0], sizes = [2, 96], strides = [1, 1]} : vector<2x128xf32> to vector<2x96xf32>
    %17 = arith.negf %16 : vector<2x96xf32>
    %18 = math.exp %17 : vector<2x96xf32>
    %cst_9 = arith.constant 1.000000e+00 : f32
    %19 = vector.broadcast %cst_9 : f32 to vector<2x96xf32>
    %20 = arith.addf %19, %18 : vector<2x96xf32>
    %21 = arith.divf %19, %20 : vector<2x96xf32>
    %22 = vector.extract_strided_slice %12 {offsets = [0, 96], sizes = [2, 32], strides = [1, 1]} : vector<2x128xf32> to vector<2x32xf32>
    %23 = math.tanh %22 : vector<2x32xf32>
    %24 = vector.extract_strided_slice %21 {offsets = [0, 32], sizes = [2, 32], strides = [1, 1]} : vector<2x96xf32> to vector<2x32xf32>
    %25 = arith.mulf %24, %2 : vector<2x32xf32>
    %26 = vector.extract_strided_slice %21 {offsets = [0, 0], sizes = [2, 32], strides = [1, 1]} : vector<2x96xf32> to vector<2x32xf32>
    %27 = arith.mulf %26, %23 : vector<2x32xf32>
    %28 = arith.addf %25, %27 : vector<2x32xf32>
    %29 = vector.extract_strided_slice %21 {offsets = [0, 64], sizes = [2, 32], strides = [1, 1]} : vector<2x96xf32> to vector<2x32xf32>
    %30 = math.tanh %28 : vector<2x32xf32>
    %31 = arith.mulf %29, %30 : vector<2x32xf32>
    %32 = vector.extract_strided_slice %15 {offsets = [0, 0], sizes = [2, 96], strides = [1, 1]} : vector<2x128xf32> to vector<2x96xf32>
    %33 = arith.negf %32 : vector<2x96xf32>
    %34 = math.exp %33 : vector<2x96xf32>
    %cst_10 = arith.constant 1.000000e+00 : f32
    %35 = vector.broadcast %cst_10 : f32 to vector<2x96xf32>
    %36 = arith.addf %35, %34 : vector<2x96xf32>
    %37 = arith.divf %35, %36 : vector<2x96xf32>
    %38 = vector.extract_strided_slice %15 {offsets = [0, 96], sizes = [2, 32], strides = [1, 1]} : vector<2x128xf32> to vector<2x32xf32>
    %39 = math.tanh %38 : vector<2x32xf32>
    %40 = vector.extract_strided_slice %37 {offsets = [0, 32], sizes = [2, 32], strides = [1, 1]} : vector<2x96xf32> to vector<2x32xf32>
    %41 = arith.mulf %40, %2 : vector<2x32xf32>
    %42 = vector.extract_strided_slice %37 {offsets = [0, 0], sizes = [2, 32], strides = [1, 1]} : vector<2x96xf32> to vector<2x32xf32>
    %43 = arith.mulf %42, %39 : vector<2x32xf32>
    %44 = arith.addf %41, %43 : vector<2x32xf32>
    %45 = vector.extract_strided_slice %37 {offsets = [0, 64], sizes = [2, 32], strides = [1, 1]} : vector<2x96xf32> to vector<2x32xf32>
    %46 = math.tanh %44 : vector<2x32xf32>
    %47 = arith.mulf %45, %46 : vector<2x32xf32>
    %48 = arith.index_cast %c0_i32 : i32 to index
    %c0_11 = arith.constant 0 : index
    %c0_12 = arith.constant 0 : index
    %49 = vector.load %arg3[%48, %c0_11, %c0_12] : memref<8x2x64xf32, #tpu.memory_space<vmem>>, vector<1x2x32xf32>
    %50 = vector.shape_cast %49 : vector<1x2x32xf32> to vector<2x32xf32>
    %51 = vector.shape_cast %31 : vector<2x32xf32> to vector<1x2x32xf32>
    tpu.vector_store %arg3[%48, %c0_11, %c0_12], %51 {strides = array<i32>} : memref<8x2x64xf32, #tpu.memory_space<vmem>>, vector<1x2x32xf32>,
    %52 = arith.index_cast %3 : i32 to index
    %c0_13 = arith.constant 0 : index
    %c32 = arith.constant 32 : index
    %53 = vector.load %arg3[%52, %c0_13, %c32] : memref<8x2x64xf32, #tpu.memory_space<vmem>>, vector<1x2x32xf32>
    %54 = vector.shape_cast %53 : vector<1x2x32xf32> to vector<2x32xf32>
    %55 = vector.shape_cast %47 : vector<2x32xf32> to vector<1x2x32xf32>
    tpu.vector_store %arg3[%52, %c0_13, %c32], %55 {strides = array<i32>} : memref<8x2x64xf32, #tpu.memory_space<vmem>>, vector<1x2x32xf32>,
    %c1_i32 = arith.constant 1 : i32
    %c7_i32_14 = arith.constant 7 : i32
    %56 = arith.subi %c7_i32_14, %c1_i32 : i32
    %57 = arith.index_cast %c1_i32 : i32 to index
    %c0_15 = arith.constant 0 : index
    %c0_16 = arith.constant 0 : index
    %58 = vector.load %arg0[%57, %c0_15, %c0_16] : memref<8x2x256xf32, #tpu.memory_space<vmem>>, vector<1x2x256xf32>
    %59 = vector.shape_cast %58 : vector<1x2x256xf32> to vector<2x256xf32>
    %60 = arith.index_cast %56 : i32 to index
    %c0_17 = arith.constant 0 : index
    %c0_18 = arith.constant 0 : index
    %61 = vector.load %arg0[%60, %c0_17, %c0_18] : memref<8x2x256xf32, #tpu.memory_space<vmem>>, vector<1x2x256xf32>
    %62 = vector.shape_cast %61 : vector<1x2x256xf32> to vector<2x256xf32>
    %63 = vector.extract_strided_slice %59 {offsets = [0, 0], sizes = [2, 128], strides = [1, 1]} : vector<2x256xf32> to vector<2x128xf32>
    %cst_19 = arith.constant dense<0.000000e+00> : vector<2x128xf32>
    %64 = tpu.matmul %31, %0, %cst_19 {dimension_numbers = #tpu.dot_dimension_numbers<[1], [0], [0], [1], [0, 0, 1, 1], [], []>} : vector<2x32xf32>, vector<32x128xf32>, vector<2x128xf32> -> vector<2x128xf32>
    %65 = arith.addf %63, %64 : vector<2x128xf32>
    %66 = vector.extract_strided_slice %62 {offsets = [0, 128], sizes = [2, 128], strides = [1, 1]} : vector<2x256xf32> to vector<2x128xf32>
    %cst_20 = arith.constant dense<0.000000e+00> : vector<2x128xf32>
    %67 = tpu.matmul %47, %1, %cst_20 {dimension_numbers = #tpu.dot_dimension_numbers<[1], [0], [0], [1], [0, 0, 1, 1], [], []>} : vector<2x32xf32>, vector<32x128xf32>, vector<2x128xf32> -> vector<2x128xf32>
    %68 = arith.addf %66, %67 : vector<2x128xf32>
    %69 = vector.extract_strided_slice %65 {offsets = [0, 0], sizes = [2, 96], strides = [1, 1]} : vector<2x128xf32> to vector<2x96xf32>
    %70 = arith.negf %69 : vector<2x96xf32>
    %71 = math.exp %70 : vector<2x96xf32>
    %cst_21 = arith.constant 1.000000e+00 : f32
    %72 = vector.broadcast %cst_21 : f32 to vector<2x96xf32>
    %73 = arith.addf %72, %71 : vector<2x96xf32>
    %74 = arith.divf %72, %73 : vector<2x96xf32>
    %75 = vector.extract_strided_slice %65 {offsets = [0, 96], sizes = [2, 32], strides = [1, 1]} : vector<2x128xf32> to vector<2x32xf32>
    %76 = math.tanh %75 : vector<2x32xf32>
    %77 = vector.extract_strided_slice %74 {offsets = [0, 32], sizes = [2, 32], strides = [1, 1]} : vector<2x96xf32> to vector<2x32xf32>
    %78 = arith.mulf %77, %28 : vector<2x32xf32>
    %79 = vector.extract_strided_slice %74 {offsets = [0, 0], sizes = [2, 32], strides = [1, 1]} : vector<2x96xf32> to vector<2x32xf32>
    %80 = arith.mulf %79, %76 : vector<2x32xf32>
    %81 = arith.addf %78, %80 : vector<2x32xf32>
    %82 = vector.extract_strided_slice %74 {offsets = [0, 64], sizes = [2, 32], strides = [1, 1]} : vector<2x96xf32> to vector<2x32xf32>
    %83 = math.tanh %81 : vector<2x32xf32>
    %84 = arith.mulf %82, %83 : vector<2x32xf32>
    %85 = vector.extract_strided_slice %68 {offsets = [0, 0], sizes = [2, 96], strides = [1, 1]} : vector<2x128xf32> to vector<2x96xf32>
    %86 = arith.negf %85 : vector<2x96xf32>
    %87 = math.exp %86 : vector<2x96xf32>
    %cst_22 = arith.constant 1.000000e+00 : f32
    %88 = vector.broadcast %cst_22 : f32 to vector<2x96xf32>
    %89 = arith.addf %88, %87 : vector<2x96xf32>
    %90 = arith.divf %88, %89 : vector<2x96xf32>
    %91 = vector.extract_strided_slice %68 {offsets = [0, 96], sizes = [2, 32], strides = [1, 1]} : vector<2x128xf32> to vector<2x32xf32>
    %92 = math.tanh %91 : vector<2x32xf32>
    %93 = vector.extract_strided_slice %90 {offsets = [0, 32], sizes = [2, 32], strides = [1, 1]} : vector<2x96xf32> to vector<2x32xf32>
    %94 = arith.mulf %93, %44 : vector<2x32xf32>
    %95 = vector.extract_strided_slice %90 {offsets = [0, 0], sizes = [2, 32], strides = [1, 1]} : vector<2x96xf32> to vector<2x32xf32>
    %96 = arith.mulf %95, %92 : vector<2x32xf32>
    %97 = arith.addf %94, %96 : vector<2x32xf32>
    %98 = vector.extract_strided_slice %90 {offsets = [0, 64], sizes = [2, 32], strides = [1, 1]} : vector<2x96xf32> to vector<2x32xf32>
    %99 = math.tanh %97 : vector<2x32xf32>
    %100 = arith.mulf %98, %99 : vector<2x32xf32>
    %101 = arith.index_cast %c1_i32 : i32 to index
    %c0_23 = arith.constant 0 : index
    %c0_24 = arith.constant 0 : index
    %102 = vector.load %arg3[%101, %c0_23, %c0_24] : memref<8x2x64xf32, #tpu.memory_space<vmem>>, vector<1x2x32xf32>
    %103 = vector.shape_cast %102 : vector<1x2x32xf32> to vector<2x32xf32>
    %104 = vector.shape_cast %84 : vector<2x32xf32> to vector<1x2x32xf32>
    tpu.vector_store %arg3[%101, %c0_23, %c0_24], %104 {strides = array<i32>} : memref<8x2x64xf32, #tpu.memory_space<vmem>>, vector<1x2x32xf32>,
    %105 = arith.index_cast %56 : i32 to index
    %c0_25 = arith.constant 0 : index
    %c32_26 = arith.constant 32 : index
    %106 = vector.load %arg3[%105, %c0_25, %c32_26] : memref<8x2x64xf32, #tpu.memory_space<vmem>>, vector<1x2x32xf32>
    %107 = vector.shape_cast %106 : vector<1x2x32xf32> to vector<2x32xf32>
    %108 = vector.shape_cast %100 : vector<2x32xf32> to vector<1x2x32xf32>
    tpu.vector_store %arg3[%105, %c0_25, %c32_26], %108 {strides = array<i32>} : memref<8x2x64xf32, #tpu.memory_space<vmem>>, vector<1x2x32xf32>,
    %c2_i32 = arith.constant 2 : i32
    %c7_i32_27 = arith.constant 7 : i32
    %109 = arith.subi %c7_i32_27, %c2_i32 : i32
    %110 = arith.index_cast %c2_i32 : i32 to index
    %c0_28 = arith.constant 0 : index
    %c0_29 = arith.constant 0 : index
    %111 = vector.load %arg0[%110, %c0_28, %c0_29] : memref<8x2x256xf32, #tpu.memory_space<vmem>>, vector<1x2x256xf32>
    %112 = vector.shape_cast %111 : vector<1x2x256xf32> to vector<2x256xf32>
    %113 = arith.index_cast %109 : i32 to index
    %c0_30 = arith.constant 0 : index
    %c0_31 = arith.constant 0 : index
    %114 = vector.load %arg0[%113, %c0_30, %c0_31] : memref<8x2x256xf32, #tpu.memory_space<vmem>>, vector<1x2x256xf32>
    %115 = vector.shape_cast %114 : vector<1x2x256xf32> to vector<2x256xf32>
    %116 = vector.extract_strided_slice %112 {offsets = [0, 0], sizes = [2, 128], strides = [1, 1]} : vector<2x256xf32> to vector<2x128xf32>
    %cst_32 = arith.constant dense<0.000000e+00> : vector<2x128xf32>
    %117 = tpu.matmul %84, %0, %cst_32 {dimension_numbers = #tpu.dot_dimension_numbers<[1], [0], [0], [1], [0, 0, 1, 1], [], []>} : vector<2x32xf32>, vector<32x128xf32>, vector<2x128xf32> -> vector<2x128xf32>
    %118 = arith.addf %116, %117 : vector<2x128xf32>
    %119 = vector.extract_strided_slice %115 {offsets = [0, 128], sizes = [2, 128], strides = [1, 1]} : vector<2x256xf32> to vector<2x128xf32>
    %cst_33 = arith.constant dense<0.000000e+00> : vector<2x128xf32>
    %120 = tpu.matmul %100, %1, %cst_33 {dimension_numbers = #tpu.dot_dimension_numbers<[1], [0], [0], [1], [0, 0, 1, 1], [], []>} : vector<2x32xf32>, vector<32x128xf32>, vector<2x128xf32> -> vector<2x128xf32>
    %121 = arith.addf %119, %120 : vector<2x128xf32>
    %122 = vector.extract_strided_slice %118 {offsets = [0, 0], sizes = [2, 96], strides = [1, 1]} : vector<2x128xf32> to vector<2x96xf32>
    %123 = arith.negf %122 : vector<2x96xf32>
    %124 = math.exp %123 : vector<2x96xf32>
    %cst_34 = arith.constant 1.000000e+00 : f32
    %125 = vector.broadcast %cst_34 : f32 to vector<2x96xf32>
    %126 = arith.addf %125, %124 : vector<2x96xf32>
    %127 = arith.divf %125, %126 : vector<2x96xf32>
    %128 = vector.extract_strided_slice %118 {offsets = [0, 96], sizes = [2, 32], strides = [1, 1]} : vector<2x128xf32> to vector<2x32xf32>
    %129 = math.tanh %128 : vector<2x32xf32>
    %130 = vector.extract_strided_slice %127 {offsets = [0, 32], sizes = [2, 32], strides = [1, 1]} : vector<2x96xf32> to vector<2x32xf32>
    %131 = arith.mulf %130, %81 : vector<2x32xf32>
    %132 = vector.extract_strided_slice %127 {offsets = [0, 0], sizes = [2, 32], strides = [1, 1]} : vector<2x96xf32> to vector<2x32xf32>
    %133 = arith.mulf %132, %129 : vector<2x32xf32>
    %134 = arith.addf %131, %133 : vector<2x32xf32>
    %135 = vector.extract_strided_slice %127 {offsets = [0, 64], sizes = [2, 32], strides = [1, 1]} : vector<2x96xf32> to vector<2x32xf32>
    %136 = math.tanh %134 : vector<2x32xf32>
    %137 = arith.mulf %135, %136 : vector<2x32xf32>
    %138 = vector.extract_strided_slice %121 {offsets = [0, 0], sizes = [2, 96], strides = [1, 1]} : vector<2x128xf32> to vector<2x96xf32>
    %139 = arith.negf %138 : vector<2x96xf32>
    %140 = math.exp %139 : vector<2x96xf32>
    %cst_35 = arith.constant 1.000000e+00 : f32
    %141 = vector.broadcast %cst_35 : f32 to vector<2x96xf32>
    %142 = arith.addf %141, %140 : vector<2x96xf32>
    %143 = arith.divf %141, %142 : vector<2x96xf32>
    %144 = vector.extract_strided_slice %121 {offsets = [0, 96], sizes = [2, 32], strides = [1, 1]} : vector<2x128xf32> to vector<2x32xf32>
    %145 = math.tanh %144 : vector<2x32xf32>
    %146 = vector.extract_strided_slice %143 {offsets = [0, 32], sizes = [2, 32], strides = [1, 1]} : vector<2x96xf32> to vector<2x32xf32>
    %147 = arith.mulf %146, %97 : vector<2x32xf32>
    %148 = vector.extract_strided_slice %143 {offsets = [0, 0], sizes = [2, 32], strides = [1, 1]} : vector<2x96xf32> to vector<2x32xf32>
    %149 = arith.mulf %148, %145 : vector<2x32xf32>
    %150 = arith.addf %147, %149 : vector<2x32xf32>
    %151 = vector.extract_strided_slice %143 {offsets = [0, 64], sizes = [2, 32], strides = [1, 1]} : vector<2x96xf32> to vector<2x32xf32>
    %152 = math.tanh %150 : vector<2x32xf32>
    %153 = arith.mulf %151, %152 : vector<2x32xf32>
    %154 = arith.index_cast %c2_i32 : i32 to index
    %c0_36 = arith.constant 0 : index
    %c0_37 = arith.constant 0 : index
    %155 = vector.load %arg3[%154, %c0_36, %c0_37] : memref<8x2x64xf32, #tpu.memory_space<vmem>>, vector<1x2x32xf32>
    %156 = vector.shape_cast %155 : vector<1x2x32xf32> to vector<2x32xf32>
    %157 = vector.shape_cast %137 : vector<2x32xf32> to vector<1x2x32xf32>
    tpu.vector_store %arg3[%154, %c0_36, %c0_37], %157 {strides = array<i32>} : memref<8x2x64xf32, #tpu.memory_space<vmem>>, vector<1x2x32xf32>,
    %158 = arith.index_cast %109 : i32 to index
    %c0_38 = arith.constant 0 : index
    %c32_39 = arith.constant 32 : index
    %159 = vector.load %arg3[%158, %c0_38, %c32_39] : memref<8x2x64xf32, #tpu.memory_space<vmem>>, vector<1x2x32xf32>
    %160 = vector.shape_cast %159 : vector<1x2x32xf32> to vector<2x32xf32>
    %161 = vector.shape_cast %153 : vector<2x32xf32> to vector<1x2x32xf32>
    tpu.vector_store %arg3[%158, %c0_38, %c32_39], %161 {strides = array<i32>} : memref<8x2x64xf32, #tpu.memory_space<vmem>>, vector<1x2x32xf32>,
    %c3_i32 = arith.constant 3 : i32
    %c7_i32_40 = arith.constant 7 : i32
    %162 = arith.subi %c7_i32_40, %c3_i32 : i32
    %163 = arith.index_cast %c3_i32 : i32 to index
    %c0_41 = arith.constant 0 : index
    %c0_42 = arith.constant 0 : index
    %164 = vector.load %arg0[%163, %c0_41, %c0_42] : memref<8x2x256xf32, #tpu.memory_space<vmem>>, vector<1x2x256xf32>
    %165 = vector.shape_cast %164 : vector<1x2x256xf32> to vector<2x256xf32>
    %166 = arith.index_cast %162 : i32 to index
    %c0_43 = arith.constant 0 : index
    %c0_44 = arith.constant 0 : index
    %167 = vector.load %arg0[%166, %c0_43, %c0_44] : memref<8x2x256xf32, #tpu.memory_space<vmem>>, vector<1x2x256xf32>
    %168 = vector.shape_cast %167 : vector<1x2x256xf32> to vector<2x256xf32>
    %169 = vector.extract_strided_slice %165 {offsets = [0, 0], sizes = [2, 128], strides = [1, 1]} : vector<2x256xf32> to vector<2x128xf32>
    %cst_45 = arith.constant dense<0.000000e+00> : vector<2x128xf32>
    %170 = tpu.matmul %137, %0, %cst_45 {dimension_numbers = #tpu.dot_dimension_numbers<[1], [0], [0], [1], [0, 0, 1, 1], [], []>} : vector<2x32xf32>, vector<32x128xf32>, vector<2x128xf32> -> vector<2x128xf32>
    %171 = arith.addf %169, %170 : vector<2x128xf32>
    %172 = vector.extract_strided_slice %168 {offsets = [0, 128], sizes = [2, 128], strides = [1, 1]} : vector<2x256xf32> to vector<2x128xf32>
    %cst_46 = arith.constant dense<0.000000e+00> : vector<2x128xf32>
    %173 = tpu.matmul %153, %1, %cst_46 {dimension_numbers = #tpu.dot_dimension_numbers<[1], [0], [0], [1], [0, 0, 1, 1], [], []>} : vector<2x32xf32>, vector<32x128xf32>, vector<2x128xf32> -> vector<2x128xf32>
    %174 = arith.addf %172, %173 : vector<2x128xf32>
    %175 = vector.extract_strided_slice %171 {offsets = [0, 0], sizes = [2, 96], strides = [1, 1]} : vector<2x128xf32> to vector<2x96xf32>
    %176 = arith.negf %175 : vector<2x96xf32>
    %177 = math.exp %176 : vector<2x96xf32>
    %cst_47 = arith.constant 1.000000e+00 : f32
    %178 = vector.broadcast %cst_47 : f32 to vector<2x96xf32>
    %179 = arith.addf %178, %177 : vector<2x96xf32>
    %180 = arith.divf %178, %179 : vector<2x96xf32>
    %181 = vector.extract_strided_slice %171 {offsets = [0, 96], sizes = [2, 32], strides = [1, 1]} : vector<2x128xf32> to vector<2x32xf32>
    %182 = math.tanh %181 : vector<2x32xf32>
    %183 = vector.extract_strided_slice %180 {offsets = [0, 32], sizes = [2, 32], strides = [1, 1]} : vector<2x96xf32> to vector<2x32xf32>
    %184 = arith.mulf %183, %134 : vector<2x32xf32>
    %185 = vector.extract_strided_slice %180 {offsets = [0, 0], sizes = [2, 32], strides = [1, 1]} : vector<2x96xf32> to vector<2x32xf32>
    %186 = arith.mulf %185, %182 : vector<2x32xf32>
    %187 = arith.addf %184, %186 : vector<2x32xf32>
    %188 = vector.extract_strided_slice %180 {offsets = [0, 64], sizes = [2, 32], strides = [1, 1]} : vector<2x96xf32> to vector<2x32xf32>
    %189 = math.tanh %187 : vector<2x32xf32>
    %190 = arith.mulf %188, %189 : vector<2x32xf32>
    %191 = vector.extract_strided_slice %174 {offsets = [0, 0], sizes = [2, 96], strides = [1, 1]} : vector<2x128xf32> to vector<2x96xf32>
    %192 = arith.negf %191 : vector<2x96xf32>
    %193 = math.exp %192 : vector<2x96xf32>
    %cst_48 = arith.constant 1.000000e+00 : f32
    %194 = vector.broadcast %cst_48 : f32 to vector<2x96xf32>
    %195 = arith.addf %194, %193 : vector<2x96xf32>
    %196 = arith.divf %194, %195 : vector<2x96xf32>
    %197 = vector.extract_strided_slice %174 {offsets = [0, 96], sizes = [2, 32], strides = [1, 1]} : vector<2x128xf32> to vector<2x32xf32>
    %198 = math.tanh %197 : vector<2x32xf32>
    %199 = vector.extract_strided_slice %196 {offsets = [0, 32], sizes = [2, 32], strides = [1, 1]} : vector<2x96xf32> to vector<2x32xf32>
    %200 = arith.mulf %199, %150 : vector<2x32xf32>
    %201 = vector.extract_strided_slice %196 {offsets = [0, 0], sizes = [2, 32], strides = [1, 1]} : vector<2x96xf32> to vector<2x32xf32>
    %202 = arith.mulf %201, %198 : vector<2x32xf32>
    %203 = arith.addf %200, %202 : vector<2x32xf32>
    %204 = vector.extract_strided_slice %196 {offsets = [0, 64], sizes = [2, 32], strides = [1, 1]} : vector<2x96xf32> to vector<2x32xf32>
    %205 = math.tanh %203 : vector<2x32xf32>
    %206 = arith.mulf %204, %205 : vector<2x32xf32>
    %207 = arith.index_cast %c3_i32 : i32 to index
    %c0_49 = arith.constant 0 : index
    %c0_50 = arith.constant 0 : index
    %208 = vector.load %arg3[%207, %c0_49, %c0_50] : memref<8x2x64xf32, #tpu.memory_space<vmem>>, vector<1x2x32xf32>
    %209 = vector.shape_cast %208 : vector<1x2x32xf32> to vector<2x32xf32>
    %210 = vector.shape_cast %190 : vector<2x32xf32> to vector<1x2x32xf32>
    tpu.vector_store %arg3[%207, %c0_49, %c0_50], %210 {strides = array<i32>} : memref<8x2x64xf32, #tpu.memory_space<vmem>>, vector<1x2x32xf32>,
    %211 = arith.index_cast %162 : i32 to index
    %c0_51 = arith.constant 0 : index
    %c32_52 = arith.constant 32 : index
    %212 = vector.load %arg3[%211, %c0_51, %c32_52] : memref<8x2x64xf32, #tpu.memory_space<vmem>>, vector<1x2x32xf32>
    %213 = vector.shape_cast %212 : vector<1x2x32xf32> to vector<2x32xf32>
    %214 = vector.shape_cast %206 : vector<2x32xf32> to vector<1x2x32xf32>
    tpu.vector_store %arg3[%211, %c0_51, %c32_52], %214 {strides = array<i32>} : memref<8x2x64xf32, #tpu.memory_space<vmem>>, vector<1x2x32xf32>,
    %c4_i32 = arith.constant 4 : i32
    %c7_i32_53 = arith.constant 7 : i32
    %215 = arith.subi %c7_i32_53, %c4_i32 : i32
    %216 = arith.index_cast %c4_i32 : i32 to index
    %c0_54 = arith.constant 0 : index
    %c0_55 = arith.constant 0 : index
    %217 = vector.load %arg0[%216, %c0_54, %c0_55] : memref<8x2x256xf32, #tpu.memory_space<vmem>>, vector<1x2x256xf32>
    %218 = vector.shape_cast %217 : vector<1x2x256xf32> to vector<2x256xf32>
    %219 = arith.index_cast %215 : i32 to index
    %c0_56 = arith.constant 0 : index
    %c0_57 = arith.constant 0 : index
    %220 = vector.load %arg0[%219, %c0_56, %c0_57] : memref<8x2x256xf32, #tpu.memory_space<vmem>>, vector<1x2x256xf32>
    %221 = vector.shape_cast %220 : vector<1x2x256xf32> to vector<2x256xf32>
    %222 = vector.extract_strided_slice %218 {offsets = [0, 0], sizes = [2, 128], strides = [1, 1]} : vector<2x256xf32> to vector<2x128xf32>
    %cst_58 = arith.constant dense<0.000000e+00> : vector<2x128xf32>
    %223 = tpu.matmul %190, %0, %cst_58 {dimension_numbers = #tpu.dot_dimension_numbers<[1], [0], [0], [1], [0, 0, 1, 1], [], []>} : vector<2x32xf32>, vector<32x128xf32>, vector<2x128xf32> -> vector<2x128xf32>
    %224 = arith.addf %222, %223 : vector<2x128xf32>
    %225 = vector.extract_strided_slice %221 {offsets = [0, 128], sizes = [2, 128], strides = [1, 1]} : vector<2x256xf32> to vector<2x128xf32>
    %cst_59 = arith.constant dense<0.000000e+00> : vector<2x128xf32>
    %226 = tpu.matmul %206, %1, %cst_59 {dimension_numbers = #tpu.dot_dimension_numbers<[1], [0], [0], [1], [0, 0, 1, 1], [], []>} : vector<2x32xf32>, vector<32x128xf32>, vector<2x128xf32> -> vector<2x128xf32>
    %227 = arith.addf %225, %226 : vector<2x128xf32>
    %228 = vector.extract_strided_slice %224 {offsets = [0, 0], sizes = [2, 96], strides = [1, 1]} : vector<2x128xf32> to vector<2x96xf32>
    %229 = arith.negf %228 : vector<2x96xf32>
    %230 = math.exp %229 : vector<2x96xf32>
    %cst_60 = arith.constant 1.000000e+00 : f32
    %231 = vector.broadcast %cst_60 : f32 to vector<2x96xf32>
    %232 = arith.addf %231, %230 : vector<2x96xf32>
    %233 = arith.divf %231, %232 : vector<2x96xf32>
    %234 = vector.extract_strided_slice %224 {offsets = [0, 96], sizes = [2, 32], strides = [1, 1]} : vector<2x128xf32> to vector<2x32xf32>
    %235 = math.tanh %234 : vector<2x32xf32>
    %236 = vector.extract_strided_slice %233 {offsets = [0, 32], sizes = [2, 32], strides = [1, 1]} : vector<2x96xf32> to vector<2x32xf32>
    %237 = arith.mulf %236, %187 : vector<2x32xf32>
    %238 = vector.extract_strided_slice %233 {offsets = [0, 0], sizes = [2, 32], strides = [1, 1]} : vector<2x96xf32> to vector<2x32xf32>
    %239 = arith.mulf %238, %235 : vector<2x32xf32>
    %240 = arith.addf %237, %239 : vector<2x32xf32>
    %241 = vector.extract_strided_slice %233 {offsets = [0, 64], sizes = [2, 32], strides = [1, 1]} : vector<2x96xf32> to vector<2x32xf32>
    %242 = math.tanh %240 : vector<2x32xf32>
    %243 = arith.mulf %241, %242 : vector<2x32xf32>
    %244 = vector.extract_strided_slice %227 {offsets = [0, 0], sizes = [2, 96], strides = [1, 1]} : vector<2x128xf32> to vector<2x96xf32>
    %245 = arith.negf %244 : vector<2x96xf32>
    %246 = math.exp %245 : vector<2x96xf32>
    %cst_61 = arith.constant 1.000000e+00 : f32
    %247 = vector.broadcast %cst_61 : f32 to vector<2x96xf32>
    %248 = arith.addf %247, %246 : vector<2x96xf32>
    %249 = arith.divf %247, %248 : vector<2x96xf32>
    %250 = vector.extract_strided_slice %227 {offsets = [0, 96], sizes = [2, 32], strides = [1, 1]} : vector<2x128xf32> to vector<2x32xf32>
    %251 = math.tanh %250 : vector<2x32xf32>
    %252 = vector.extract_strided_slice %249 {offsets = [0, 32], sizes = [2, 32], strides = [1, 1]} : vector<2x96xf32> to vector<2x32xf32>
    %253 = arith.mulf %252, %203 : vector<2x32xf32>
    %254 = vector.extract_strided_slice %249 {offsets = [0, 0], sizes = [2, 32], strides = [1, 1]} : vector<2x96xf32> to vector<2x32xf32>
    %255 = arith.mulf %254, %251 : vector<2x32xf32>
    %256 = arith.addf %253, %255 : vector<2x32xf32>
    %257 = vector.extract_strided_slice %249 {offsets = [0, 64], sizes = [2, 32], strides = [1, 1]} : vector<2x96xf32> to vector<2x32xf32>
    %258 = math.tanh %256 : vector<2x32xf32>
    %259 = arith.mulf %257, %258 : vector<2x32xf32>
    %260 = arith.index_cast %c4_i32 : i32 to index
    %c0_62 = arith.constant 0 : index
    %c0_63 = arith.constant 0 : index
    %261 = vector.load %arg3[%260, %c0_62, %c0_63] : memref<8x2x64xf32, #tpu.memory_space<vmem>>, vector<1x2x32xf32>
    %262 = vector.shape_cast %261 : vector<1x2x32xf32> to vector<2x32xf32>
    %263 = vector.shape_cast %243 : vector<2x32xf32> to vector<1x2x32xf32>
    tpu.vector_store %arg3[%260, %c0_62, %c0_63], %263 {strides = array<i32>} : memref<8x2x64xf32, #tpu.memory_space<vmem>>, vector<1x2x32xf32>,
    %264 = arith.index_cast %215 : i32 to index
    %c0_64 = arith.constant 0 : index
    %c32_65 = arith.constant 32 : index
    %265 = vector.load %arg3[%264, %c0_64, %c32_65] : memref<8x2x64xf32, #tpu.memory_space<vmem>>, vector<1x2x32xf32>
    %266 = vector.shape_cast %265 : vector<1x2x32xf32> to vector<2x32xf32>
    %267 = vector.shape_cast %259 : vector<2x32xf32> to vector<1x2x32xf32>
    tpu.vector_store %arg3[%264, %c0_64, %c32_65], %267 {strides = array<i32>} : memref<8x2x64xf32, #tpu.memory_space<vmem>>, vector<1x2x32xf32>,
    %c5_i32 = arith.constant 5 : i32
    %c7_i32_66 = arith.constant 7 : i32
    %268 = arith.subi %c7_i32_66, %c5_i32 : i32
    %269 = arith.index_cast %c5_i32 : i32 to index
    %c0_67 = arith.constant 0 : index
    %c0_68 = arith.constant 0 : index
    %270 = vector.load %arg0[%269, %c0_67, %c0_68] : memref<8x2x256xf32, #tpu.memory_space<vmem>>, vector<1x2x256xf32>
    %271 = vector.shape_cast %270 : vector<1x2x256xf32> to vector<2x256xf32>
    %272 = arith.index_cast %268 : i32 to index
    %c0_69 = arith.constant 0 : index
    %c0_70 = arith.constant 0 : index
    %273 = vector.load %arg0[%272, %c0_69, %c0_70] : memref<8x2x256xf32, #tpu.memory_space<vmem>>, vector<1x2x256xf32>
    %274 = vector.shape_cast %273 : vector<1x2x256xf32> to vector<2x256xf32>
    %275 = vector.extract_strided_slice %271 {offsets = [0, 0], sizes = [2, 128], strides = [1, 1]} : vector<2x256xf32> to vector<2x128xf32>
    %cst_71 = arith.constant dense<0.000000e+00> : vector<2x128xf32>
    %276 = tpu.matmul %243, %0, %cst_71 {dimension_numbers = #tpu.dot_dimension_numbers<[1], [0], [0], [1], [0, 0, 1, 1], [], []>} : vector<2x32xf32>, vector<32x128xf32>, vector<2x128xf32> -> vector<2x128xf32>
    %277 = arith.addf %275, %276 : vector<2x128xf32>
    %278 = vector.extract_strided_slice %274 {offsets = [0, 128], sizes = [2, 128], strides = [1, 1]} : vector<2x256xf32> to vector<2x128xf32>
    %cst_72 = arith.constant dense<0.000000e+00> : vector<2x128xf32>
    %279 = tpu.matmul %259, %1, %cst_72 {dimension_numbers = #tpu.dot_dimension_numbers<[1], [0], [0], [1], [0, 0, 1, 1], [], []>} : vector<2x32xf32>, vector<32x128xf32>, vector<2x128xf32> -> vector<2x128xf32>
    %280 = arith.addf %278, %279 : vector<2x128xf32>
    %281 = vector.extract_strided_slice %277 {offsets = [0, 0], sizes = [2, 96], strides = [1, 1]} : vector<2x128xf32> to vector<2x96xf32>
    %282 = arith.negf %281 : vector<2x96xf32>
    %283 = math.exp %282 : vector<2x96xf32>
    %cst_73 = arith.constant 1.000000e+00 : f32
    %284 = vector.broadcast %cst_73 : f32 to vector<2x96xf32>
    %285 = arith.addf %284, %283 : vector<2x96xf32>
    %286 = arith.divf %284, %285 : vector<2x96xf32>
    %287 = vector.extract_strided_slice %277 {offsets = [0, 96], sizes = [2, 32], strides = [1, 1]} : vector<2x128xf32> to vector<2x32xf32>
    %288 = math.tanh %287 : vector<2x32xf32>
    %289 = vector.extract_strided_slice %286 {offsets = [0, 32], sizes = [2, 32], strides = [1, 1]} : vector<2x96xf32> to vector<2x32xf32>
    %290 = arith.mulf %289, %240 : vector<2x32xf32>
    %291 = vector.extract_strided_slice %286 {offsets = [0, 0], sizes = [2, 32], strides = [1, 1]} : vector<2x96xf32> to vector<2x32xf32>
    %292 = arith.mulf %291, %288 : vector<2x32xf32>
    %293 = arith.addf %290, %292 : vector<2x32xf32>
    %294 = vector.extract_strided_slice %286 {offsets = [0, 64], sizes = [2, 32], strides = [1, 1]} : vector<2x96xf32> to vector<2x32xf32>
    %295 = math.tanh %293 : vector<2x32xf32>
    %296 = arith.mulf %294, %295 : vector<2x32xf32>
    %297 = vector.extract_strided_slice %280 {offsets = [0, 0], sizes = [2, 96], strides = [1, 1]} : vector<2x128xf32> to vector<2x96xf32>
    %298 = arith.negf %297 : vector<2x96xf32>
    %299 = math.exp %298 : vector<2x96xf32>
    %cst_74 = arith.constant 1.000000e+00 : f32
    %300 = vector.broadcast %cst_74 : f32 to vector<2x96xf32>
    %301 = arith.addf %300, %299 : vector<2x96xf32>
    %302 = arith.divf %300, %301 : vector<2x96xf32>
    %303 = vector.extract_strided_slice %280 {offsets = [0, 96], sizes = [2, 32], strides = [1, 1]} : vector<2x128xf32> to vector<2x32xf32>
    %304 = math.tanh %303 : vector<2x32xf32>
    %305 = vector.extract_strided_slice %302 {offsets = [0, 32], sizes = [2, 32], strides = [1, 1]} : vector<2x96xf32> to vector<2x32xf32>
    %306 = arith.mulf %305, %256 : vector<2x32xf32>
    %307 = vector.extract_strided_slice %302 {offsets = [0, 0], sizes = [2, 32], strides = [1, 1]} : vector<2x96xf32> to vector<2x32xf32>
    %308 = arith.mulf %307, %304 : vector<2x32xf32>
    %309 = arith.addf %306, %308 : vector<2x32xf32>
    %310 = vector.extract_strided_slice %302 {offsets = [0, 64], sizes = [2, 32], strides = [1, 1]} : vector<2x96xf32> to vector<2x32xf32>
    %311 = math.tanh %309 : vector<2x32xf32>
    %312 = arith.mulf %310, %311 : vector<2x32xf32>
    %313 = arith.index_cast %c5_i32 : i32 to index
    %c0_75 = arith.constant 0 : index
    %c0_76 = arith.constant 0 : index
    %314 = vector.load %arg3[%313, %c0_75, %c0_76] : memref<8x2x64xf32, #tpu.memory_space<vmem>>, vector<1x2x32xf32>
    %315 = vector.shape_cast %314 : vector<1x2x32xf32> to vector<2x32xf32>
    %316 = vector.shape_cast %296 : vector<2x32xf32> to vector<1x2x32xf32>
    tpu.vector_store %arg3[%313, %c0_75, %c0_76], %316 {strides = array<i32>} : memref<8x2x64xf32, #tpu.memory_space<vmem>>, vector<1x2x32xf32>,
    %317 = arith.index_cast %268 : i32 to index
    %c0_77 = arith.constant 0 : index
    %c32_78 = arith.constant 32 : index
    %318 = vector.load %arg3[%317, %c0_77, %c32_78] : memref<8x2x64xf32, #tpu.memory_space<vmem>>, vector<1x2x32xf32>
    %319 = vector.shape_cast %318 : vector<1x2x32xf32> to vector<2x32xf32>
    %320 = vector.shape_cast %312 : vector<2x32xf32> to vector<1x2x32xf32>
    tpu.vector_store %arg3[%317, %c0_77, %c32_78], %320 {strides = array<i32>} : memref<8x2x64xf32, #tpu.memory_space<vmem>>, vector<1x2x32xf32>,
    %c6_i32 = arith.constant 6 : i32
    %c7_i32_79 = arith.constant 7 : i32
    %321 = arith.subi %c7_i32_79, %c6_i32 : i32
    %322 = arith.index_cast %c6_i32 : i32 to index
    %c0_80 = arith.constant 0 : index
    %c0_81 = arith.constant 0 : index
    %323 = vector.load %arg0[%322, %c0_80, %c0_81] : memref<8x2x256xf32, #tpu.memory_space<vmem>>, vector<1x2x256xf32>
    %324 = vector.shape_cast %323 : vector<1x2x256xf32> to vector<2x256xf32>
    %325 = arith.index_cast %321 : i32 to index
    %c0_82 = arith.constant 0 : index
    %c0_83 = arith.constant 0 : index
    %326 = vector.load %arg0[%325, %c0_82, %c0_83] : memref<8x2x256xf32, #tpu.memory_space<vmem>>, vector<1x2x256xf32>
    %327 = vector.shape_cast %326 : vector<1x2x256xf32> to vector<2x256xf32>
    %328 = vector.extract_strided_slice %324 {offsets = [0, 0], sizes = [2, 128], strides = [1, 1]} : vector<2x256xf32> to vector<2x128xf32>
    %cst_84 = arith.constant dense<0.000000e+00> : vector<2x128xf32>
    %329 = tpu.matmul %296, %0, %cst_84 {dimension_numbers = #tpu.dot_dimension_numbers<[1], [0], [0], [1], [0, 0, 1, 1], [], []>} : vector<2x32xf32>, vector<32x128xf32>, vector<2x128xf32> -> vector<2x128xf32>
    %330 = arith.addf %328, %329 : vector<2x128xf32>
    %331 = vector.extract_strided_slice %327 {offsets = [0, 128], sizes = [2, 128], strides = [1, 1]} : vector<2x256xf32> to vector<2x128xf32>
    %cst_85 = arith.constant dense<0.000000e+00> : vector<2x128xf32>
    %332 = tpu.matmul %312, %1, %cst_85 {dimension_numbers = #tpu.dot_dimension_numbers<[1], [0], [0], [1], [0, 0, 1, 1], [], []>} : vector<2x32xf32>, vector<32x128xf32>, vector<2x128xf32> -> vector<2x128xf32>
    %333 = arith.addf %331, %332 : vector<2x128xf32>
    %334 = vector.extract_strided_slice %330 {offsets = [0, 0], sizes = [2, 96], strides = [1, 1]} : vector<2x128xf32> to vector<2x96xf32>
    %335 = arith.negf %334 : vector<2x96xf32>
    %336 = math.exp %335 : vector<2x96xf32>
    %cst_86 = arith.constant 1.000000e+00 : f32
    %337 = vector.broadcast %cst_86 : f32 to vector<2x96xf32>
    %338 = arith.addf %337, %336 : vector<2x96xf32>
    %339 = arith.divf %337, %338 : vector<2x96xf32>
    %340 = vector.extract_strided_slice %330 {offsets = [0, 96], sizes = [2, 32], strides = [1, 1]} : vector<2x128xf32> to vector<2x32xf32>
    %341 = math.tanh %340 : vector<2x32xf32>
    %342 = vector.extract_strided_slice %339 {offsets = [0, 32], sizes = [2, 32], strides = [1, 1]} : vector<2x96xf32> to vector<2x32xf32>
    %343 = arith.mulf %342, %293 : vector<2x32xf32>
    %344 = vector.extract_strided_slice %339 {offsets = [0, 0], sizes = [2, 32], strides = [1, 1]} : vector<2x96xf32> to vector<2x32xf32>
    %345 = arith.mulf %344, %341 : vector<2x32xf32>
    %346 = arith.addf %343, %345 : vector<2x32xf32>
    %347 = vector.extract_strided_slice %339 {offsets = [0, 64], sizes = [2, 32], strides = [1, 1]} : vector<2x96xf32> to vector<2x32xf32>
    %348 = math.tanh %346 : vector<2x32xf32>
    %349 = arith.mulf %347, %348 : vector<2x32xf32>
    %350 = vector.extract_strided_slice %333 {offsets = [0, 0], sizes = [2, 96], strides = [1, 1]} : vector<2x128xf32> to vector<2x96xf32>
    %351 = arith.negf %350 : vector<2x96xf32>
    %352 = math.exp %351 : vector<2x96xf32>
    %cst_87 = arith.constant 1.000000e+00 : f32
    %353 = vector.broadcast %cst_87 : f32 to vector<2x96xf32>
    %354 = arith.addf %353, %352 : vector<2x96xf32>
    %355 = arith.divf %353, %354 : vector<2x96xf32>
    %356 = vector.extract_strided_slice %333 {offsets = [0, 96], sizes = [2, 32], strides = [1, 1]} : vector<2x128xf32> to vector<2x32xf32>
    %357 = math.tanh %356 : vector<2x32xf32>
    %358 = vector.extract_strided_slice %355 {offsets = [0, 32], sizes = [2, 32], strides = [1, 1]} : vector<2x96xf32> to vector<2x32xf32>
    %359 = arith.mulf %358, %309 : vector<2x32xf32>
    %360 = vector.extract_strided_slice %355 {offsets = [0, 0], sizes = [2, 32], strides = [1, 1]} : vector<2x96xf32> to vector<2x32xf32>
    %361 = arith.mulf %360, %357 : vector<2x32xf32>
    %362 = arith.addf %359, %361 : vector<2x32xf32>
    %363 = vector.extract_strided_slice %355 {offsets = [0, 64], sizes = [2, 32], strides = [1, 1]} : vector<2x96xf32> to vector<2x32xf32>
    %364 = math.tanh %362 : vector<2x32xf32>
    %365 = arith.mulf %363, %364 : vector<2x32xf32>
    %366 = arith.index_cast %c6_i32 : i32 to index
    %c0_88 = arith.constant 0 : index
    %c0_89 = arith.constant 0 : index
    %367 = vector.load %arg3[%366, %c0_88, %c0_89] : memref<8x2x64xf32, #tpu.memory_space<vmem>>, vector<1x2x32xf32>
    %368 = vector.shape_cast %367 : vector<1x2x32xf32> to vector<2x32xf32>
    %369 = vector.shape_cast %349 : vector<2x32xf32> to vector<1x2x32xf32>
    tpu.vector_store %arg3[%366, %c0_88, %c0_89], %369 {strides = array<i32>} : memref<8x2x64xf32, #tpu.memory_space<vmem>>, vector<1x2x32xf32>,
    %370 = arith.index_cast %321 : i32 to index
    %c0_90 = arith.constant 0 : index
    %c32_91 = arith.constant 32 : index
    %371 = vector.load %arg3[%370, %c0_90, %c32_91] : memref<8x2x64xf32, #tpu.memory_space<vmem>>, vector<1x2x32xf32>
    %372 = vector.shape_cast %371 : vector<1x2x32xf32> to vector<2x32xf32>
    %373 = vector.shape_cast %365 : vector<2x32xf32> to vector<1x2x32xf32>
    tpu.vector_store %arg3[%370, %c0_90, %c32_91], %373 {strides = array<i32>} : memref<8x2x64xf32, #tpu.memory_space<vmem>>, vector<1x2x32xf32>,
    %c7_i32_92 = arith.constant 7 : i32
    %c7_i32_93 = arith.constant 7 : i32
    %374 = arith.subi %c7_i32_93, %c7_i32_92 : i32
    %375 = arith.index_cast %c7_i32_92 : i32 to index
    %c0_94 = arith.constant 0 : index
    %c0_95 = arith.constant 0 : index
    %376 = vector.load %arg0[%375, %c0_94, %c0_95] : memref<8x2x256xf32, #tpu.memory_space<vmem>>, vector<1x2x256xf32>
    %377 = vector.shape_cast %376 : vector<1x2x256xf32> to vector<2x256xf32>
    %378 = arith.index_cast %374 : i32 to index
    %c0_96 = arith.constant 0 : index
    %c0_97 = arith.constant 0 : index
    %379 = vector.load %arg0[%378, %c0_96, %c0_97] : memref<8x2x256xf32, #tpu.memory_space<vmem>>, vector<1x2x256xf32>
    %380 = vector.shape_cast %379 : vector<1x2x256xf32> to vector<2x256xf32>
    %381 = vector.extract_strided_slice %377 {offsets = [0, 0], sizes = [2, 128], strides = [1, 1]} : vector<2x256xf32> to vector<2x128xf32>
    %cst_98 = arith.constant dense<0.000000e+00> : vector<2x128xf32>
    %382 = tpu.matmul %349, %0, %cst_98 {dimension_numbers = #tpu.dot_dimension_numbers<[1], [0], [0], [1], [0, 0, 1, 1], [], []>} : vector<2x32xf32>, vector<32x128xf32>, vector<2x128xf32> -> vector<2x128xf32>
    %383 = arith.addf %381, %382 : vector<2x128xf32>
    %384 = vector.extract_strided_slice %380 {offsets = [0, 128], sizes = [2, 128], strides = [1, 1]} : vector<2x256xf32> to vector<2x128xf32>
    %cst_99 = arith.constant dense<0.000000e+00> : vector<2x128xf32>
    %385 = tpu.matmul %365, %1, %cst_99 {dimension_numbers = #tpu.dot_dimension_numbers<[1], [0], [0], [1], [0, 0, 1, 1], [], []>} : vector<2x32xf32>, vector<32x128xf32>, vector<2x128xf32> -> vector<2x128xf32>
    %386 = arith.addf %384, %385 : vector<2x128xf32>
    %387 = vector.extract_strided_slice %383 {offsets = [0, 0], sizes = [2, 96], strides = [1, 1]} : vector<2x128xf32> to vector<2x96xf32>
    %388 = arith.negf %387 : vector<2x96xf32>
    %389 = math.exp %388 : vector<2x96xf32>
    %cst_100 = arith.constant 1.000000e+00 : f32
    %390 = vector.broadcast %cst_100 : f32 to vector<2x96xf32>
    %391 = arith.addf %390, %389 : vector<2x96xf32>
    %392 = arith.divf %390, %391 : vector<2x96xf32>
    %393 = vector.extract_strided_slice %383 {offsets = [0, 96], sizes = [2, 32], strides = [1, 1]} : vector<2x128xf32> to vector<2x32xf32>
    %394 = math.tanh %393 : vector<2x32xf32>
    %395 = vector.extract_strided_slice %392 {offsets = [0, 32], sizes = [2, 32], strides = [1, 1]} : vector<2x96xf32> to vector<2x32xf32>
    %396 = arith.mulf %395, %346 : vector<2x32xf32>
    %397 = vector.extract_strided_slice %392 {offsets = [0, 0], sizes = [2, 32], strides = [1, 1]} : vector<2x96xf32> to vector<2x32xf32>
    %398 = arith.mulf %397, %394 : vector<2x32xf32>
    %399 = arith.addf %396, %398 : vector<2x32xf32>
    %400 = vector.extract_strided_slice %392 {offsets = [0, 64], sizes = [2, 32], strides = [1, 1]} : vector<2x96xf32> to vector<2x32xf32>
    %401 = math.tanh %399 : vector<2x32xf32>
    %402 = arith.mulf %400, %401 : vector<2x32xf32>
    %403 = vector.extract_strided_slice %386 {offsets = [0, 0], sizes = [2, 96], strides = [1, 1]} : vector<2x128xf32> to vector<2x96xf32>
    %404 = arith.negf %403 : vector<2x96xf32>
    %405 = math.exp %404 : vector<2x96xf32>
    %cst_101 = arith.constant 1.000000e+00 : f32
    %406 = vector.broadcast %cst_101 : f32 to vector<2x96xf32>
    %407 = arith.addf %406, %405 : vector<2x96xf32>
    %408 = arith.divf %406, %407 : vector<2x96xf32>
    %409 = vector.extract_strided_slice %386 {offsets = [0, 96], sizes = [2, 32], strides = [1, 1]} : vector<2x128xf32> to vector<2x32xf32>
    %410 = math.tanh %409 : vector<2x32xf32>
    %411 = vector.extract_strided_slice %408 {offsets = [0, 32], sizes = [2, 32], strides = [1, 1]} : vector<2x96xf32> to vector<2x32xf32>
    %412 = arith.mulf %411, %362 : vector<2x32xf32>
    %413 = vector.extract_strided_slice %408 {offsets = [0, 0], sizes = [2, 32], strides = [1, 1]} : vector<2x96xf32> to vector<2x32xf32>
    %414 = arith.mulf %413, %410 : vector<2x32xf32>
    %415 = arith.addf %412, %414 : vector<2x32xf32>
    %416 = vector.extract_strided_slice %408 {offsets = [0, 64], sizes = [2, 32], strides = [1, 1]} : vector<2x96xf32> to vector<2x32xf32>
    %417 = math.tanh %415 : vector<2x32xf32>
    %418 = arith.mulf %416, %417 : vector<2x32xf32>
    %419 = arith.index_cast %c7_i32_92 : i32 to index
    %c0_102 = arith.constant 0 : index
    %c0_103 = arith.constant 0 : index
    %420 = vector.load %arg3[%419, %c0_102, %c0_103] : memref<8x2x64xf32, #tpu.memory_space<vmem>>, vector<1x2x32xf32>
    %421 = vector.shape_cast %420 : vector<1x2x32xf32> to vector<2x32xf32>
    %422 = vector.shape_cast %402 : vector<2x32xf32> to vector<1x2x32xf32>
    tpu.vector_store %arg3[%419, %c0_102, %c0_103], %422 {strides = array<i32>} : memref<8x2x64xf32, #tpu.memory_space<vmem>>, vector<1x2x32xf32>,
    %423 = arith.index_cast %374 : i32 to index
    %c0_104 = arith.constant 0 : index
    %c32_105 = arith.constant 32 : index
    %424 = vector.load %arg3[%423, %c0_104, %c32_105] : memref<8x2x64xf32, #tpu.memory_space<vmem>>, vector<1x2x32xf32>
    %425 = vector.shape_cast %424 : vector<1x2x32xf32> to vector<2x32xf32>
    %426 = vector.shape_cast %418 : vector<2x32xf32> to vector<1x2x32xf32>
    tpu.vector_store %arg3[%423, %c0_104, %c32_105], %426 {strides = array<i32>} : memref<8x2x64xf32, #tpu.memory_space<vmem>>, vector<1x2x32xf32>,
    %c8_i32 = arith.constant 8 : i32
    return
  }
}

</mosaic_0001>

<bundles_post_ra>
// kernel: encoder_forward.1
= control target key start
LH: loop header
LB: loop body
LE: loop exit
PB: predicated region body
PF: predicated region fallthrough
CT: control target
= control target key end

     0   :  { %v2288_v0 = vmov 0.0   ;;  %vm2289_vm0 = vmmov 0   ;;  %s2290_s30 = smov 32   ;;  %v2291_v40 = vmov 1983009808   ;;  %v226_v42 = vlaneseq  ;;  %s2292_s4 = smov 64   ;;  %s2807_s1 = inlined_call_operand.vmem [shape: f32[32,128], index: 1, kind: input, shape index: {}]   ;;  %s2808_s2 = inlined_call_operand.vmem [shape: f32[32,128], index: 2, kind: input, shape index: {}]   ;;  %s2809_s0 = inlined_call_operand.vmem [shape: f32[8,2,256], index: 0, kind: input, shape index: {}]   ;;  %s2810_s3 = inlined_call_operand.vmem [shape: f32[8,2,64], index: 3, kind: output, shape index: {}]  }
   0x1   :  { %1978 = vmatprep.subr.mxu0 %v2288_v0  ;;  %v2318_v1 = vld [vmem:[%s2807_s1 + $0x18] sm:$0xff]  ;;  %1989 = vmatprep.subr.mxu1 %v2288_v0  ;;  %v2324_v2 = vld [vmem:[%s2807_s1 + $0x10] sm:$0xff]  ;;  %v2343_v5 = vld [vmem:[%s2807_s1 + $0x8] sm:$0xff]  ;;  %v224_v41 = vunpack.c.l.s4 %v2291_v40  ;;  %vm233_vm1 = vcmask 254976   ;;  %vm25_vm2 = vcmask 261120   ;;  %vm247_vm3 = vcmask 517376  }
   0x2   :  { %v2329_v3 = vld [vmem:[%s2808_s2 + $0x18] sm:$0xff]  ;;  %1979 = vmatpush3.msra.mxu0 %v2318_v1  ;;  %v2336_v4 = vld [vmem:[%s2808_s2 + $0x10] sm:$0xff]  ;;  %v2350_v6 = vld [vmem:[%s2808_s2 + $0x8] sm:$0xff]  ;;  %1986 = vmatprep.mubr.msk.f32.mxu0 %vm2289_vm0, %v2288_v0  ;;  %v227_v44 = vshrl.u32 %v226_v42, 7 }
   0x3   :  { %1990 = vmatpush3.msra.mxu1 %v2329_v3  ;;  %1980 = vmatprep.subr.mxu0 %v2288_v0  ;;  %v2357_v7 = vld [vmem:[%s2807_s1] sm:$0xff]  ;;  %v1840_v9 = vld [vmem:[%s2809_s0 + $0x1c] sm:$0xf]  ;;  %v225_v43 = vunpack.c.0.s8 %v224_v41  ;;  %v1845_v55 = vld [vmem:[%s2809_s0 + $0x18] sm:$0xf] }
   0x4   :  { %1991 = vmatprep.subr.mxu1 %v2288_v0  ;;  %1981 = vmatpush3.msra.mxu0 %v2324_v2  ;;  %v2365_v8 = vld [vmem:[%s2808_s2] sm:$0xff]  ;;  %v171_v11 = vrot.slane %v1840_v9, 2  ;;  %v401_v58 = vrot.slane %v1845_v55, 2 }
   0x5   :  { %1992 = vmatpush3.msra.mxu1 %v2336_v4  ;;  %1982 = vmatprep.subr.mxu0 %v2288_v0  ;;  %v22_v10 = vld [vmem:[%s2809_s0] sm:$0xf]  ;;  %v2416_v45 = vsub.s32 %v225_v43, %v227_v44  ;;  %v1844_v54 = vld [vmem:[%s2809_s0 + $0x4] sm:$0xf] }
   0x6   :  { %1993 = vmatprep.subr.mxu1 %v2288_v0  ;;  %1983 = vmatpush3.msra.mxu0 %v2343_v5 }
   0x7   :  { %1984 = vmatprep.subr.mxu0 %v2288_v0  ;;  %1994 = vmatpush3.msra.mxu1 %v2350_v6 }
   0x8   :  { %1985 = vmatpush3.msra.mxu0 %v2357_v7  ;;  %1995 = vmatprep.subr.mxu1 %v2288_v0 }
   0x9   :  { %1987 = vmatmul.mubr.f32.vlgmr.msra.gmra.mxu0 %v2288_v0  ;;  %1996 = vmatpush3.msra.mxu1 %v2365_v8 }
   0xa   :  { %1997 = vmatprep.mubr.msk.f32.mxu1 %vm2289_vm0, %v2288_v0  ;;  %2000 = vmatprep.subr.mxu0 %v2288_v0 }
   0xb   :  { %1998 = vmatmul.mubr.f32.vlgmr.msra.gmra.mxu1 %v2288_v0  ;;  %2001 = vmatpush3.msra.mxu0 %v2318_v1 }
   0xc   :  { %2002 = vmatprep.subr.mxu0 %v2288_v0  ;;  %2011 = vmatprep.subr.mxu1 %v2288_v0 }
   0xd   :  { %2003 = vmatpush3.msra.mxu0 %v2324_v2  ;;  %2012 = vmatpush3.msra.mxu1 %v2329_v3 }
   0xe   :  { %2004 = vmatprep.subr.mxu0 %v2288_v0  ;;  %2013 = vmatprep.subr.mxu1 %v2288_v0 }
   0xf   :  { %2005 = vmatpush3.msra.mxu0 %v2343_v5  ;;  %2008 = vmatprep.mubr.msk.f32.mxu0 %vm2289_vm0, %v2288_v0 }
  0x10   :  { %2006 = vmatprep.subr.mxu0 %v2288_v0  ;;  %2014 = vmatpush3.msra.mxu1 %v2336_v4 }
  0x11   :  { %2007 = vmatpush3.msra.mxu0 %v2357_v7  ;;  %2015 = vmatprep.subr.mxu1 %v2288_v0 }
  0x12   :  { %2016 = vmatpush3.msra.mxu1 %v2350_v6  ;;  %2019 = vmatprep.mubr.msk.f32.mxu1 %vm2289_vm0, %v2288_v0 }
  0x13   :  { %2017 = vmatprep.subr.mxu1 %v2288_v0  ;;  %2022 = vmatprep.subr.mxu0 %v2288_v0 }
  0x14   :  { %2018 = vmatpush3.msra.mxu1 %v2365_v8 }
  0x15   :  { %2033 = vmatprep.subr.mxu1 %v2288_v0 }
  0xc9   :  { %v95_v12 = vpop.f32.mrf.mxu0 }
  0xca   :  { %v99_v13 = vadd.f32 %v95_v12, %v22_v10 }
  0xcb   :  { %v1988_v14 = vpop.f32.mrf.mxu0  ;;  %v166_v15 = vpop.f32.mrf.mxu1 }
  0xcc   :  { %2160 = vtanh.f32 %v99_v13  ;;  %v173_v16 = vadd.f32 %v171_v11, %v166_v15  ;;  %v1841_v20 = vmul.f32 -1.442695, %v99_v13 }
  0xcd   :  { %v1999_v17 = vpop.f32.mrf.mxu1 }
  0xce   :  { %2162 = vtanh.f32 %v173_v16  ;;  %v1842_v21 = vmul.f32 -1.442695, %v173_v16 }
  0xcf   :  { %2164 = vpow2.f32 %v1841_v20 }
  0xd0   :  { %2166 = vpow2.f32 %v1842_v21 }
  0xd9   :  { %v2161_v18 = vpop.eup %2160 }
  0xda   :  { %183 = vrot.lane.b32.xlu0 %v2161_v18, %s2290_s30 }
  0xdb   :  { %v2163_v19 = vpop.eup %2162 }
  0xdc   :  { %v2165_v22 = vpop.eup %2164 }
  0xdd   :  { %v177_v23 = vadd.f32 1.0, %v2165_v22  ;;  %v2167_v24 = vpop.eup %2166 }
  0xde   :  { %207 = vrot.lane.b32.xlu0 %v2163_v19, %s2290_s30  ;;  %v201_v25 = vadd.f32 1.0, %v2167_v24 }
  0xdf   :  { %2168 = vrcp.f32 %v177_v23 }
  0xe0   :  { %2170 = vrcp.f32 %v201_v25 }
  0xec   :  { %v2169_v26 = vpop.eup %2168 }
  0xed   :  { %v2171_v29 = vpop.eup %2170  ;;  %v181_v32 = vmul.f32 0.0, %v2169_v26 }
  0xee   :  { %v205_v35 = vmul.f32 0.0, %v2171_v29 }
 0x14c   :  { %v184_v27 = vpop.permute.xlu0 %183 }
 0x14d   :  { %v186_v28 = vmul.f32 %v2169_v26, %v184_v27 }
 0x14f   :  { %188 = vrot.lane.b32.xlu1 %v186_v28, %s2290_s30 }
 0x150   :  { %v208_v30 = vpop.permute.xlu0 %207 }
 0x151   :  { %v210_v31 = vmul.f32 %v2171_v29, %v208_v30 }
 0x153   :  { %212 = vrot.lane.b32.xlu1 %v210_v31, %s2290_s30 }
 0x1c1   :  { %v189_v33 = vpop.permute.xlu1 %188 }
 0x1c2   :  { %v2408_v34 = vadd.f32 %v189_v33, %v181_v32 }
 0x1c4   :  { %2172 = vtanh.f32 %v2408_v34 }
 0x1c5   :  { %v213_v36 = vpop.permute.xlu1 %212 }
 0x1c6   :  { %v2411_v37 = vadd.f32 %v213_v36, %v205_v35 }
 0x1c8   :  { %2174 = vtanh.f32 %v2411_v37 }
 0x1d1   :  { %v2173_v38 = vpop.eup %2172 }
 0x1d2   :  { %194 = vrot.lane.b32.xlu0 %v2173_v38, %s2290_s30  ;;  %v1852_v38 = vld [vmem:[%s2809_s0 + $0x8] sm:$0xf] }
 0x1d5   :  { %v2175_v39 = vpop.eup %2174 }
 0x1d6   :  { %218 = vrot.lane.b32.xlu1 %v2175_v39, %s2290_s30  ;;  %v1853_v39 = vld [vmem:[%s2809_s0 + $0x14] sm:$0xf] }
 0x1d7   :  { %v630_v42 = vrot.slane %v1853_v39, 2 }
 0x244   :  { %v195_v46 = vpop.permute.xlu0 %194 }
 0x245   :  { %v197_v47 = vmul.f32 %v2169_v26, %v195_v46 }
 0x247   :  { %v229_v48 = vrot.slane %v197_v47, %v2416_v45 }
 0x248   :  { %v219_v49 = vpop.permute.xlu1 %218 }
 0x249   :  { %v221_v50 = vmul.f32 %v2171_v29, %v219_v49  ;;  %230 = vrot.lane.b32.xlu0 %v229_v48, %s2292_s4 }
 0x24b   :  { %v2421_v51 = vrot.slane %v221_v50, %v2416_v45 }
 0x24d   :  { %326 = vrot.lane.b32.xlu1 %v2421_v51, %s2292_s4 }
 0x2bb   :  { %v231_v52 = vpop.permute.xlu0 %230 }
 0x2bc   :  { %234 = vst.msk [vmem:[%s2810_s3] sm:$0x3] %vm233_vm1, %v231_v52  ;;  %2009 = vmatmul.mubr.msk.f32.vlgmr.msra.gmra.mxu0 %vm25_vm2, %v231_v52 }
 0x2bd   :  { %2023 = vmatpush3.msra.mxu0 %v2318_v1  ;;  %2030 = vmatprep.mubr.msk.f32.mxu0 %vm2289_vm0, %v2288_v0 }
 0x2be   :  { %2024 = vmatprep.subr.mxu0 %v2288_v0 }
 0x2bf   :  { %v327_v53 = vpop.permute.xlu1 %326  ;;  %2025 = vmatpush3.msra.mxu0 %v2324_v2 }
 0x2c0   :  { %2020 = vmatmul.mubr.msk.f32.vlgmr.msra.gmra.mxu1 %vm25_vm2, %v327_v53  ;;  %2026 = vmatprep.subr.mxu0 %v2288_v0 }
 0x2c1   :  { %2027 = vmatpush3.msra.mxu0 %v2343_v5  ;;  %2034 = vmatpush3.msra.mxu1 %v2329_v3 }
 0x2c2   :  { %2028 = vmatprep.subr.mxu0 %v2288_v0  ;;  %2035 = vmatprep.subr.mxu1 %v2288_v0 }
 0x2c3   :  { %2029 = vmatpush3.msra.mxu0 %v2357_v7  ;;  %2036 = vmatpush3.msra.mxu1 %v2336_v4 }
 0x2c4   :  { %2037 = vmatprep.subr.mxu1 %v2288_v0  ;;  %2041 = vmatprep.mubr.msk.f32.mxu1 %vm2289_vm0, %v2288_v0 }
 0x2c5   :  { %2038 = vmatpush3.msra.mxu1 %v2350_v6  ;;  %2044 = vmatprep.subr.mxu0 %v2288_v0 }
 0x2c6   :  { %2039 = vmatprep.subr.mxu1 %v2288_v0 }
 0x2c7   :  { %2040 = vmatpush3.msra.mxu1 %v2365_v8 }
 0x2c8   :  { %2055 = vmatprep.subr.mxu1 %v2288_v0 }
 0x37c   :  { %v321_v56 = vpop.f32.mrf.mxu0 }
 0x37d   :  { %v325_v57 = vadd.f32 %v1844_v54, %v321_v56 }
 0x37e   :  { %v2010_v59 = vpop.f32.mrf.mxu0 }
 0x37f   :  { %2176 = vtanh.f32 %v325_v57  ;;  %v1848_v10 = vmul.f32 -1.442695, %v325_v57 }
 0x380   :  { %v396_v60 = vpop.f32.mrf.mxu1 }
 0x381   :  { %v403_v61 = vadd.f32 %v401_v58, %v396_v60 }
 0x382   :  { %v2021_v62 = vpop.f32.mrf.mxu1 }
 0x383   :  { %2178 = vtanh.f32 %v403_v61  ;;  %v1849_v11 = vmul.f32 -1.442695, %v403_v61 }
 0x384   :  { %2180 = vpow2.f32 %v1848_v10 }
 0x385   :  { %2182 = vpow2.f32 %v1849_v11 }
 0x38c   :  { %v2177_v63 = vpop.eup %2176 }
 0x38d   :  { %413 = vrot.lane.b32.xlu0 %v2177_v63, %s2290_s30 }
 0x390   :  { %v2179_v9 = vpop.eup %2178 }
 0x391   :  { %437 = vrot.lane.b32.xlu1 %v2179_v9, %s2290_s30  ;;  %v2181_v12 = vpop.eup %2180 }
 0x392   :  { %v407_v13 = vadd.f32 1.0, %v2181_v12  ;;  %v2183_v14 = vpop.eup %2182 }
 0x393   :  { %v431_v15 = vadd.f32 1.0, %v2183_v14 }
 0x394   :  { %2184 = vrcp.f32 %v407_v13 }
 0x395   :  { %2186 = vrcp.f32 %v431_v15 }
 0x3a1   :  { %v2185_v16 = vpop.eup %2184 }
 0x3a2   :  { %v2187_v19 = vpop.eup %2186  ;;  %v411_v22 = vmul.f32 %v2185_v16, %v2408_v34 }
 0x3a3   :  { %v435_v25 = vmul.f32 %v2187_v19, %v2411_v37 }
 0x3ff   :  { %v414_v17 = vpop.permute.xlu0 %413 }
 0x400   :  { %v416_v18 = vmul.f32 %v2185_v16, %v414_v17 }
 0x402   :  { %418 = vrot.lane.b32.xlu0 %v416_v18, %s2290_s30 }
 0x403   :  { %v438_v20 = vpop.permute.xlu1 %437 }
 0x404   :  { %v440_v21 = vmul.f32 %v2187_v19, %v438_v20 }
 0x406   :  { %442 = vrot.lane.b32.xlu1 %v440_v21, %s2290_s30 }
 0x474   :  { %v419_v23 = vpop.permute.xlu0 %418 }
 0x475   :  { %v2462_v24 = vadd.f32 %v419_v23, %v411_v22 }
 0x477   :  { %2188 = vtanh.f32 %v2462_v24 }
 0x478   :  { %v443_v26 = vpop.permute.xlu1 %442 }
 0x479   :  { %v2466_v27 = vadd.f32 %v443_v26, %v435_v25  ;;  %v1861_v25 = vld [vmem:[%s2809_s0 + $0x10] sm:$0xf] }
 0x47b   :  { %2190 = vtanh.f32 %v2466_v27 }
 0x484   :  { %v2189_v28 = vpop.eup %2188 }
 0x485   :  { %424 = vrot.lane.b32.xlu0 %v2189_v28, %s2290_s30  ;;  %v859_v28 = vrot.slane %v1861_v25, 2 }
 0x488   :  { %v2191_v29 = vpop.eup %2190 }
 0x489   :  { %448 = vrot.lane.b32.xlu1 %v2191_v29, %s2290_s30 }
 0x4f7   :  { %v425_v30 = vpop.permute.xlu0 %424 }
 0x4f8   :  { %v427_v31 = vmul.f32 %v2185_v16, %v425_v30 }
 0x4fa   :  { %v459_v32 = vrot.slane %v427_v31, %v2416_v45 }
 0x4fb   :  { %v449_v33 = vpop.permute.xlu1 %448 }
 0x4fc   :  { %v451_v34 = vmul.f32 %v2187_v19, %v449_v33  ;;  %460 = vrot.lane.b32.xlu0 %v459_v32, %s2292_s4 }
 0x4fe   :  { %v2474_v35 = vrot.slane %v451_v34, %v2416_v45 }
 0x500   :  { %555 = vrot.lane.b32.xlu1 %v2474_v35, %s2292_s4 }
 0x56e   :  { %v461_v36 = vpop.permute.xlu0 %460 }
 0x56f   :  { %1850 = vst.msk [vmem:[%s2810_s3 + $0x2] sm:$0x3] %vm233_vm1, %v461_v36  ;;  %2031 = vmatmul.mubr.msk.f32.vlgmr.msra.gmra.mxu0 %vm25_vm2, %v461_v36 }
 0x570   :  { %2045 = vmatpush3.msra.mxu0 %v2318_v1  ;;  %2052 = vmatprep.mubr.msk.f32.mxu0 %vm2289_vm0, %v2288_v0 }
 0x571   :  { %2046 = vmatprep.subr.mxu0 %v2288_v0 }
 0x572   :  { %v556_v37 = vpop.permute.xlu1 %555  ;;  %2047 = vmatpush3.msra.mxu0 %v2324_v2 }
 0x573   :  { %2042 = vmatmul.mubr.msk.f32.vlgmr.msra.gmra.mxu1 %vm25_vm2, %v556_v37  ;;  %2048 = vmatprep.subr.mxu0 %v2288_v0 }
 0x574   :  { %2049 = vmatpush3.msra.mxu0 %v2343_v5  ;;  %2056 = vmatpush3.msra.mxu1 %v2329_v3 }
 0x575   :  { %2050 = vmatprep.subr.mxu0 %v2288_v0  ;;  %2057 = vmatprep.subr.mxu1 %v2288_v0 }
 0x576   :  { %2051 = vmatpush3.msra.mxu0 %v2357_v7  ;;  %2058 = vmatpush3.msra.mxu1 %v2336_v4 }
 0x577   :  { %2059 = vmatprep.subr.mxu1 %v2288_v0  ;;  %2063 = vmatprep.mubr.msk.f32.mxu1 %vm2289_vm0, %v2288_v0 }
 0x578   :  { %2060 = vmatpush3.msra.mxu1 %v2350_v6  ;;  %2066 = vmatprep.subr.mxu0 %v2288_v0 }
 0x579   :  { %2061 = vmatprep.subr.mxu1 %v2288_v0 }
 0x57a   :  { %2062 = vmatpush3.msra.mxu1 %v2365_v8 }
 0x57b   :  { %2077 = vmatprep.subr.mxu1 %v2288_v0 }
 0x62f   :  { %v550_v40 = vpop.f32.mrf.mxu0 }
 0x630   :  { %v554_v41 = vadd.f32 %v1852_v38, %v550_v40 }
 0x631   :  { %v2032_v43 = vpop.f32.mrf.mxu0 }
 0x632   :  { %2192 = vtanh.f32 %v554_v41  ;;  %v1856_v50 = vmul.f32 -1.442695, %v554_v41 }
 0x633   :  { %v625_v44 = vpop.f32.mrf.mxu1 }
 0x634   :  { %v632_v46 = vadd.f32 %v630_v42, %v625_v44 }
 0x635   :  { %v2043_v47 = vpop.f32.mrf.mxu1 }
 0x636   :  { %2194 = vtanh.f32 %v632_v46  ;;  %v1857_v52 = vmul.f32 -1.442695, %v632_v46 }
 0x637   :  { %2196 = vpow2.f32 %v1856_v50 }
 0x638   :  { %2198 = vpow2.f32 %v1857_v52 }
 0x63f   :  { %v2193_v48 = vpop.eup %2192 }
 0x640   :  { %642 = vrot.lane.b32.xlu0 %v2193_v48, %s2290_s30 }
 0x643   :  { %v2195_v49 = vpop.eup %2194 }
 0x644   :  { %666 = vrot.lane.b32.xlu1 %v2195_v49, %s2290_s30  ;;  %v2197_v53 = vpop.eup %2196 }
 0x645   :  { %v636_v54 = vadd.f32 1.0, %v2197_v53  ;;  %v2199_v55 = vpop.eup %2198 }
 0x646   :  { %v660_v56 = vadd.f32 1.0, %v2199_v55 }
 0x647   :  { %2200 = vrcp.f32 %v636_v54 }
 0x648   :  { %2202 = vrcp.f32 %v660_v56 }
 0x654   :  { %v2201_v57 = vpop.eup %2200 }
 0x655   :  { %v2203_v60 = vpop.eup %2202  ;;  %v640_v63 = vmul.f32 %v2201_v57, %v2462_v24  ;;  %v1860_v24 = vld [vmem:[%s2809_s0 + $0xc] sm:$0xf] }
 0x656   :  { %v664_v11 = vmul.f32 %v2203_v60, %v2466_v27 }
 0x6b2   :  { %v643_v58 = vpop.permute.xlu0 %642 }
 0x6b3   :  { %v645_v59 = vmul.f32 %v2201_v57, %v643_v58 }
 0x6b5   :  { %647 = vrot.lane.b32.xlu0 %v645_v59, %s2290_s30 }
 0x6b6   :  { %v667_v61 = vpop.permute.xlu1 %666 }
 0x6b7   :  { %v669_v62 = vmul.f32 %v2203_v60, %v667_v61 }
 0x6b9   :  { %671 = vrot.lane.b32.xlu1 %v669_v62, %s2290_s30 }
 0x727   :  { %v648_v9 = vpop.permute.xlu0 %647 }
 0x728   :  { %v2515_v10 = vadd.f32 %v648_v9, %v640_v63 }
 0x72a   :  { %2204 = vtanh.f32 %v2515_v10 }
 0x72b   :  { %v672_v12 = vpop.permute.xlu1 %671 }
 0x72c   :  { %v2519_v13 = vadd.f32 %v672_v12, %v664_v11  ;;  %v1868_v11 = vld [vmem:[%s2809_s0 + $0x10] sm:$0xf]  ;;  %v1869_v12 = vld [vmem:[%s2809_s0 + $0xc] sm:$0xf] }
 0x72e   :  { %2206 = vtanh.f32 %v2519_v13 }
 0x737   :  { %v2205_v14 = vpop.eup %2204 }
 0x738   :  { %653 = vrot.lane.b32.xlu0 %v2205_v14, %s2290_s30 }
 0x73b   :  { %v2207_v15 = vpop.eup %2206 }
 0x73c   :  { %677 = vrot.lane.b32.xlu1 %v2207_v15, %s2290_s30  ;;  %v1086_v15 = vrot.slane %v1869_v12, 2 }
 0x7aa   :  { %v654_v16 = vpop.permute.xlu0 %653 }
 0x7ab   :  { %v656_v17 = vmul.f32 %v2201_v57, %v654_v16 }
 0x7ad   :  { %v688_v18 = vrot.slane %v656_v17, %v2416_v45 }
 0x7ae   :  { %v678_v19 = vpop.permute.xlu1 %677 }
 0x7af   :  { %v680_v20 = vmul.f32 %v2203_v60, %v678_v19  ;;  %689 = vrot.lane.b32.xlu0 %v688_v18, %s2292_s4 }
 0x7b1   :  { %v2527_v21 = vrot.slane %v680_v20, %v2416_v45 }
 0x7b3   :  { %784 = vrot.lane.b32.xlu1 %v2527_v21, %s2292_s4 }
 0x821   :  { %v690_v22 = vpop.permute.xlu0 %689 }
 0x822   :  { %1858 = vst.msk [vmem:[%s2810_s3 + $0x4] sm:$0x3] %vm233_vm1, %v690_v22  ;;  %2053 = vmatmul.mubr.msk.f32.vlgmr.msra.gmra.mxu0 %vm25_vm2, %v690_v22 }
 0x823   :  { %2067 = vmatpush3.msra.mxu0 %v2318_v1  ;;  %2074 = vmatprep.mubr.msk.f32.mxu0 %vm2289_vm0, %v2288_v0 }
 0x824   :  { %2068 = vmatprep.subr.mxu0 %v2288_v0 }
 0x825   :  { %v785_v23 = vpop.permute.xlu1 %784  ;;  %2069 = vmatpush3.msra.mxu0 %v2324_v2 }
 0x826   :  { %2064 = vmatmul.mubr.msk.f32.vlgmr.msra.gmra.mxu1 %vm25_vm2, %v785_v23  ;;  %2070 = vmatprep.subr.mxu0 %v2288_v0 }
 0x827   :  { %2071 = vmatpush3.msra.mxu0 %v2343_v5  ;;  %2078 = vmatpush3.msra.mxu1 %v2329_v3 }
 0x828   :  { %2072 = vmatprep.subr.mxu0 %v2288_v0  ;;  %2079 = vmatprep.subr.mxu1 %v2288_v0 }
 0x829   :  { %2073 = vmatpush3.msra.mxu0 %v2357_v7  ;;  %2080 = vmatpush3.msra.mxu1 %v2336_v4 }
 0x82a   :  { %2081 = vmatprep.subr.mxu1 %v2288_v0  ;;  %2085 = vmatprep.mubr.msk.f32.mxu1 %vm2289_vm0, %v2288_v0 }
 0x82b   :  { %2082 = vmatpush3.msra.mxu1 %v2350_v6  ;;  %2088 = vmatprep.subr.mxu0 %v2288_v0 }
 0x82c   :  { %2083 = vmatprep.subr.mxu1 %v2288_v0 }
 0x82d   :  { %2084 = vmatpush3.msra.mxu1 %v2365_v8 }
 0x82e   :  { %2099 = vmatprep.subr.mxu1 %v2288_v0 }
 0x8e2   :  { %v779_v26 = vpop.f32.mrf.mxu0 }
 0x8e3   :  { %v783_v27 = vadd.f32 %v1860_v24, %v779_v26 }
 0x8e4   :  { %v2054_v29 = vpop.f32.mrf.mxu0 }
 0x8e5   :  { %2208 = vtanh.f32 %v783_v27  ;;  %v1864_v36 = vmul.f32 -1.442695, %v783_v27 }
 0x8e6   :  { %v854_v30 = vpop.f32.mrf.mxu1 }
 0x8e7   :  { %v861_v31 = vadd.f32 %v859_v28, %v854_v30 }
 0x8e8   :  { %v2065_v32 = vpop.f32.mrf.mxu1 }
 0x8e9   :  { %2210 = vtanh.f32 %v861_v31  ;;  %v1865_v37 = vmul.f32 -1.442695, %v861_v31 }
 0x8ea   :  { %2212 = vpow2.f32 %v1864_v36 }
 0x8eb   :  { %2214 = vpow2.f32 %v1865_v37 }
 0x8f2   :  { %v2209_v33 = vpop.eup %2208 }
 0x8f3   :  { %871 = vrot.lane.b32.xlu0 %v2209_v33, %s2290_s30 }
 0x8f6   :  { %v2211_v34 = vpop.eup %2210 }
 0x8f7   :  { %895 = vrot.lane.b32.xlu1 %v2211_v34, %s2290_s30  ;;  %v2213_v38 = vpop.eup %2212 }
 0x8f8   :  { %v865_v39 = vadd.f32 1.0, %v2213_v38  ;;  %v2215_v40 = vpop.eup %2214 }
 0x8f9   :  { %v889_v41 = vadd.f32 1.0, %v2215_v40 }
 0x8fa   :  { %2216 = vrcp.f32 %v865_v39 }
 0x8fb   :  { %2218 = vrcp.f32 %v889_v41 }
 0x907   :  { %v2217_v42 = vpop.eup %2216 }
 0x908   :  { %v2219_v46 = vpop.eup %2218  ;;  %v869_v49 = vmul.f32 %v2217_v42, %v2515_v10 }
 0x909   :  { %v893_v53 = vmul.f32 %v2219_v46, %v2519_v13 }
 0x965   :  { %v872_v43 = vpop.permute.xlu0 %871 }
 0x966   :  { %v874_v44 = vmul.f32 %v2217_v42, %v872_v43 }
 0x968   :  { %876 = vrot.lane.b32.xlu0 %v874_v44, %s2290_s30 }
 0x969   :  { %v896_v47 = vpop.permute.xlu1 %895 }
 0x96a   :  { %v898_v48 = vmul.f32 %v2219_v46, %v896_v47 }
 0x96c   :  { %900 = vrot.lane.b32.xlu1 %v898_v48, %s2290_s30 }
 0x9da   :  { %v877_v50 = vpop.permute.xlu0 %876 }
 0x9db   :  { %v2568_v52 = vadd.f32 %v877_v50, %v869_v49 }
 0x9dd   :  { %2220 = vtanh.f32 %v2568_v52 }
 0x9de   :  { %v901_v54 = vpop.permute.xlu1 %900 }
 0x9df   :  { %v2572_v55 = vadd.f32 %v901_v54, %v893_v53  ;;  %v1876_v54 = vld [vmem:[%s2809_s0 + $0x14] sm:$0xf] }
 0x9e1   :  { %2222 = vtanh.f32 %v2572_v55 }
 0x9ea   :  { %v2221_v56 = vpop.eup %2220 }
 0x9eb   :  { %882 = vrot.lane.b32.xlu0 %v2221_v56, %s2290_s30 }
 0x9ee   :  { %v2223_v57 = vpop.eup %2222 }
 0x9ef   :  { %906 = vrot.lane.b32.xlu1 %v2223_v57, %s2290_s30 }
 0xa5d   :  { %v883_v58 = vpop.permute.xlu0 %882 }
 0xa5e   :  { %v885_v59 = vmul.f32 %v2217_v42, %v883_v58 }
 0xa60   :  { %v917_v60 = vrot.slane %v885_v59, %v2416_v45 }
 0xa61   :  { %v907_v61 = vpop.permute.xlu1 %906 }
 0xa62   :  { %v909_v62 = vmul.f32 %v2219_v46, %v907_v61  ;;  %918 = vrot.lane.b32.xlu0 %v917_v60, %s2292_s4 }
 0xa64   :  { %v2580_v63 = vrot.slane %v909_v62, %v2416_v45 }
 0xa66   :  { %1011 = vrot.lane.b32.xlu1 %v2580_v63, %s2292_s4 }
 0xad4   :  { %v919_v9 = vpop.permute.xlu0 %918 }
 0xad5   :  { %1866 = vst.msk [vmem:[%s2810_s3 + $0x6] sm:$0x3] %vm233_vm1, %v919_v9  ;;  %2075 = vmatmul.mubr.msk.f32.vlgmr.msra.gmra.mxu0 %vm25_vm2, %v919_v9 }
 0xad6   :  { %2089 = vmatpush3.msra.mxu0 %v2318_v1  ;;  %2096 = vmatprep.mubr.msk.f32.mxu0 %vm2289_vm0, %v2288_v0 }
 0xad7   :  { %2090 = vmatprep.subr.mxu0 %v2288_v0 }
 0xad8   :  { %v1012_v10 = vpop.permute.xlu1 %1011  ;;  %2091 = vmatpush3.msra.mxu0 %v2324_v2 }
 0xad9   :  { %2086 = vmatmul.mubr.msk.f32.vlgmr.msra.gmra.mxu1 %vm25_vm2, %v1012_v10  ;;  %2092 = vmatprep.subr.mxu0 %v2288_v0 }
 0xada   :  { %2093 = vmatpush3.msra.mxu0 %v2343_v5  ;;  %2100 = vmatpush3.msra.mxu1 %v2329_v3 }
 0xadb   :  { %2094 = vmatprep.subr.mxu0 %v2288_v0  ;;  %2101 = vmatprep.subr.mxu1 %v2288_v0 }
 0xadc   :  { %2095 = vmatpush3.msra.mxu0 %v2357_v7  ;;  %2102 = vmatpush3.msra.mxu1 %v2336_v4 }
 0xadd   :  { %2103 = vmatprep.subr.mxu1 %v2288_v0  ;;  %2107 = vmatprep.mubr.msk.f32.mxu1 %vm2289_vm0, %v2288_v0 }
 0xade   :  { %2104 = vmatpush3.msra.mxu1 %v2350_v6  ;;  %2110 = vmatprep.subr.mxu0 %v2288_v0 }
 0xadf   :  { %2105 = vmatprep.subr.mxu1 %v2288_v0 }
 0xae0   :  { %2106 = vmatpush3.msra.mxu1 %v2365_v8 }
 0xae1   :  { %2121 = vmatprep.subr.mxu1 %v2288_v0 }
 0xb95   :  { %v1006_v13 = vpop.f32.mrf.mxu0 }
 0xb96   :  { %v1010_v14 = vadd.f32 %v1868_v11, %v1006_v13 }
 0xb97   :  { %v2076_v16 = vpop.f32.mrf.mxu0 }
 0xb98   :  { %2224 = vtanh.f32 %v1010_v14  ;;  %v1872_v23 = vmul.f32 -1.442695, %v1010_v14 }
 0xb99   :  { %v1081_v17 = vpop.f32.mrf.mxu1 }
 0xb9a   :  { %v1088_v18 = vadd.f32 %v1086_v15, %v1081_v17 }
 0xb9b   :  { %v2087_v19 = vpop.f32.mrf.mxu1 }
 0xb9c   :  { %2226 = vtanh.f32 %v1088_v18  ;;  %v1873_v24 = vmul.f32 -1.442695, %v1088_v18 }
 0xb9d   :  { %2228 = vpow2.f32 %v1872_v23 }
 0xb9e   :  { %2230 = vpow2.f32 %v1873_v24 }
 0xba5   :  { %v2225_v20 = vpop.eup %2224 }
 0xba6   :  { %1098 = vrot.lane.b32.xlu0 %v2225_v20, %s2290_s30 }
 0xba9   :  { %v2227_v22 = vpop.eup %2226 }
 0xbaa   :  { %1122 = vrot.lane.b32.xlu1 %v2227_v22, %s2290_s30  ;;  %v2229_v25 = vpop.eup %2228 }
 0xbab   :  { %v1092_v26 = vadd.f32 1.0, %v2229_v25  ;;  %v2231_v27 = vpop.eup %2230 }
 0xbac   :  { %v1116_v28 = vadd.f32 1.0, %v2231_v27 }
 0xbad   :  { %2232 = vrcp.f32 %v1092_v26 }
 0xbae   :  { %2234 = vrcp.f32 %v1116_v28 }
 0xbba   :  { %v2233_v29 = vpop.eup %2232 }
 0xbbb   :  { %v2235_v32 = vpop.eup %2234  ;;  %v1096_v36 = vmul.f32 %v2233_v29, %v2568_v52 }
 0xbbc   :  { %v1120_v39 = vmul.f32 %v2235_v32, %v2572_v55  ;;  %v1877_v55 = vld [vmem:[%s2809_s0 + $0x8] sm:$0xf] }
 0xbbd   :  { %v1311_v58 = vrot.slane %v1877_v55, 2 }
 0xc18   :  { %v1099_v30 = vpop.permute.xlu0 %1098 }
 0xc19   :  { %v1101_v31 = vmul.f32 %v2233_v29, %v1099_v30 }
 0xc1b   :  { %1103 = vrot.lane.b32.xlu0 %v1101_v31, %s2290_s30 }
 0xc1c   :  { %v1123_v33 = vpop.permute.xlu1 %1122 }
 0xc1d   :  { %v1125_v34 = vmul.f32 %v2235_v32, %v1123_v33 }
 0xc1f   :  { %1127 = vrot.lane.b32.xlu1 %v1125_v34, %s2290_s30 }
 0xc8d   :  { %v1104_v37 = vpop.permute.xlu0 %1103 }
 0xc8e   :  { %v2621_v38 = vadd.f32 %v1104_v37, %v1096_v36 }
 0xc90   :  { %2236 = vtanh.f32 %v2621_v38 }
 0xc91   :  { %v1128_v40 = vpop.permute.xlu1 %1127 }
 0xc92   :  { %v2625_v41 = vadd.f32 %v1128_v40, %v1120_v39 }
 0xc94   :  { %2238 = vtanh.f32 %v2625_v41 }
 0xc9d   :  { %v2237_v42 = vpop.eup %2236 }
 0xc9e   :  { %1109 = vrot.lane.b32.xlu0 %v2237_v42, %s2290_s30 }
 0xca1   :  { %v2239_v43 = vpop.eup %2238 }
 0xca2   :  { %1133 = vrot.lane.b32.xlu1 %v2239_v43, %s2290_s30 }
 0xd10   :  { %v1110_v44 = vpop.permute.xlu0 %1109 }
 0xd11   :  { %v1112_v46 = vmul.f32 %v2233_v29, %v1110_v44 }
 0xd13   :  { %v1144_v47 = vrot.slane %v1112_v46, %v2416_v45 }
 0xd14   :  { %v1134_v48 = vpop.permute.xlu1 %1133 }
 0xd15   :  { %v1136_v49 = vmul.f32 %v2235_v32, %v1134_v48  ;;  %1145 = vrot.lane.b32.xlu0 %v1144_v47, %s2292_s4 }
 0xd17   :  { %v2633_v50 = vrot.slane %v1136_v49, %v2416_v45 }
 0xd19   :  { %1236 = vrot.lane.b32.xlu1 %v2633_v50, %s2292_s4 }
 0xd87   :  { %v2637_v52 = vpop.permute.xlu0 %1145 }
 0xd88   :  { %2097 = vmatmul.mubr.msk.f32.vlgmr.msra.gmra.mxu0 %vm25_vm2, %v2637_v52 }
 0xd89   :  { %2111 = vmatpush3.msra.mxu0 %v2318_v1  ;;  %2118 = vmatprep.mubr.msk.f32.mxu0 %vm2289_vm0, %v2288_v0 }
 0xd8a   :  { %2112 = vmatprep.subr.mxu0 %v2288_v0 }
 0xd8b   :  { %v1237_v53 = vpop.permute.xlu1 %1236  ;;  %2113 = vmatpush3.msra.mxu0 %v2324_v2 }
 0xd8c   :  { %2108 = vmatmul.mubr.msk.f32.vlgmr.msra.gmra.mxu1 %vm25_vm2, %v1237_v53  ;;  %2114 = vmatprep.subr.mxu0 %v2288_v0 }
 0xd8d   :  { %2115 = vmatpush3.msra.mxu0 %v2343_v5  ;;  %2122 = vmatpush3.msra.mxu1 %v2329_v3 }
 0xd8e   :  { %2116 = vmatprep.subr.mxu0 %v2288_v0  ;;  %2123 = vmatprep.subr.mxu1 %v2288_v0 }
 0xd8f   :  { %2117 = vmatpush3.msra.mxu0 %v2357_v7  ;;  %2124 = vmatpush3.msra.mxu1 %v2336_v4 }
 0xd90   :  { %2125 = vmatprep.subr.mxu1 %v2288_v0  ;;  %2129 = vmatprep.mubr.msk.f32.mxu1 %vm2289_vm0, %v2288_v0 }
 0xd91   :  { %2126 = vmatpush3.msra.mxu1 %v2350_v6  ;;  %2132 = vmatprep.subr.mxu0 %v2288_v0 }
 0xd92   :  { %2127 = vmatprep.subr.mxu1 %v2288_v0 }
 0xd93   :  { %2128 = vmatpush3.msra.mxu1 %v2365_v8 }
 0xd94   :  { %2143 = vmatprep.subr.mxu1 %v2288_v0 }
 0xe48   :  { %v1231_v56 = vpop.f32.mrf.mxu0 }
 0xe49   :  { %v1235_v57 = vadd.f32 %v1876_v54, %v1231_v56 }
 0xe4a   :  { %v2098_v59 = vpop.f32.mrf.mxu0 }
 0xe4b   :  { %2240 = vtanh.f32 %v1235_v57  ;;  %v1880_v11 = vmul.f32 -1.442695, %v1235_v57 }
 0xe4c   :  { %v1306_v60 = vpop.f32.mrf.mxu1 }
 0xe4d   :  { %v1313_v61 = vadd.f32 %v1311_v58, %v1306_v60 }
 0xe4e   :  { %v2109_v62 = vpop.f32.mrf.mxu1 }
 0xe4f   :  { %2242 = vtanh.f32 %v1313_v61  ;;  %v1881_v12 = vmul.f32 -1.442695, %v1313_v61 }
 0xe50   :  { %2244 = vpow2.f32 %v1880_v11 }
 0xe51   :  { %2246 = vpow2.f32 %v1881_v12 }
 0xe58   :  { %v2241_v9 = vpop.eup %2240 }
 0xe59   :  { %1323 = vrot.lane.b32.xlu0 %v2241_v9, %s2290_s30 }
 0xe5c   :  { %v2243_v10 = vpop.eup %2242 }
 0xe5d   :  { %1347 = vrot.lane.b32.xlu1 %v2243_v10, %s2290_s30  ;;  %v2245_v13 = vpop.eup %2244 }
 0xe5e   :  { %v1317_v14 = vadd.f32 1.0, %v2245_v13  ;;  %v2247_v15 = vpop.eup %2246 }
 0xe5f   :  { %v1341_v16 = vadd.f32 1.0, %v2247_v15 }
 0xe60   :  { %2248 = vrcp.f32 %v1317_v14 }
 0xe61   :  { %2250 = vrcp.f32 %v1341_v16 }
 0xe6d   :  { %v2249_v17 = vpop.eup %2248 }
 0xe6e   :  { %v2251_v20 = vpop.eup %2250  ;;  %v1321_v24 = vmul.f32 %v2249_v17, %v2621_v38 }
 0xe6f   :  { %v1345_v27 = vmul.f32 %v2251_v20, %v2625_v41 }
 0xecb   :  { %v1324_v18 = vpop.permute.xlu0 %1323 }
 0xecc   :  { %v1326_v19 = vmul.f32 %v2249_v17, %v1324_v18 }
 0xece   :  { %1328 = vrot.lane.b32.xlu0 %v1326_v19, %s2290_s30 }
 0xecf   :  { %v1348_v22 = vpop.permute.xlu1 %1347 }
 0xed0   :  { %v1350_v23 = vmul.f32 %v2251_v20, %v1348_v22  ;;  %v1892_v22 = vld [vmem:[%s2809_s0 + $0x1c] sm:$0xf] }
 0xed2   :  { %1352 = vrot.lane.b32.xlu1 %v1350_v23, %s2290_s30  ;;  %v1612_v23 = vld [vmem:[%s2809_s0] sm:$0xf] }
 0xf40   :  { %v1329_v25 = vpop.permute.xlu0 %1328 }
 0xf41   :  { %v2673_v26 = vadd.f32 %v1329_v25, %v1321_v24 }
 0xf43   :  { %2252 = vtanh.f32 %v2673_v26 }
 0xf44   :  { %v1353_v28 = vpop.permute.xlu1 %1352 }
 0xf45   :  { %v2677_v29 = vadd.f32 %v1353_v28, %v1345_v27 }
 0xf47   :  { %2254 = vtanh.f32 %v2677_v29 }
 0xf50   :  { %v2253_v30 = vpop.eup %2252 }
 0xf51   :  { %1334 = vrot.lane.b32.xlu0 %v2253_v30, %s2290_s30 }
 0xf54   :  { %v2255_v31 = vpop.eup %2254 }
 0xf55   :  { %1358 = vrot.lane.b32.xlu1 %v2255_v31, %s2290_s30 }
 0xfc3   :  { %v1335_v32 = vpop.permute.xlu0 %1334 }
 0xfc4   :  { %v1337_v33 = vmul.f32 %v2249_v17, %v1335_v32 }
 0xfc6   :  { %v1369_v34 = vrot.slane %v1337_v33, %v2416_v45 }
 0xfc7   :  { %v1359_v36 = vpop.permute.xlu1 %1358 }
 0xfc8   :  { %v1361_v37 = vmul.f32 %v2251_v20, %v1359_v36  ;;  %1370 = vrot.lane.b32.xlu0 %v1369_v34, %s2292_s4 }
 0xfca   :  { %v2685_v38 = vrot.slane %v1361_v37, %v2416_v45 }
 0xfcc   :  { %1461 = vrot.lane.b32.xlu1 %v2685_v38, %s2292_s4 }
0x103a   :  { %v2689_v39 = vpop.permute.xlu0 %1370 }
0x103b   :  { %2119 = vmatmul.mubr.msk.f32.vlgmr.msra.gmra.mxu0 %vm25_vm2, %v2689_v39 }
0x103c   :  { %2133 = vmatpush3.msra.mxu0 %v2318_v1  ;;  %2140 = vmatprep.mubr.msk.f32.mxu0 %vm2289_vm0, %v2288_v0  ;;  %v1884_v1 = vld [vmem:[%s2809_s0 + $0x18] sm:$0xf] }
0x103d   :  { %2134 = vmatprep.subr.mxu0 %v2288_v0 }
0x103e   :  { %v1462_v40 = vpop.permute.xlu1 %1461  ;;  %2135 = vmatpush3.msra.mxu0 %v2324_v2  ;;  %v1885_v2 = vld [vmem:[%s2809_s0 + $0x4] sm:$0xf]  ;;  %s2293_s0 = smov 96  }
0x103f   :  { %2130 = vmatmul.mubr.msk.f32.vlgmr.msra.gmra.mxu1 %vm25_vm2, %v1462_v40  ;;  %2136 = vmatprep.subr.mxu0 %v2288_v0 }
0x1040   :  { %2137 = vmatpush3.msra.mxu0 %v2343_v5  ;;  %2144 = vmatpush3.msra.mxu1 %v2329_v3  ;;  %v1536_v5 = vrot.slane %v1885_v2, 2 }
0x1041   :  { %2138 = vmatprep.subr.mxu0 %v2288_v0  ;;  %2145 = vmatprep.subr.mxu1 %v2288_v0 }
0x1042   :  { %2139 = vmatpush3.msra.mxu0 %v2357_v7  ;;  %2146 = vmatpush3.msra.mxu1 %v2336_v4 }
0x1043   :  { %2147 = vmatprep.subr.mxu1 %v2288_v0  ;;  %2151 = vmatprep.mubr.msk.f32.mxu1 %vm2289_vm0, %v2288_v0 }
0x1044   :  { %2148 = vmatpush3.msra.mxu1 %v2350_v6 }
0x1045   :  { %2149 = vmatprep.subr.mxu1 %v2288_v0 }
0x1046   :  { %2150 = vmatpush3.msra.mxu1 %v2365_v8 }
0x10fb   :  { %v1456_v3 = vpop.f32.mrf.mxu0 }
0x10fc   :  { %v1460_v4 = vadd.f32 %v1884_v1, %v1456_v3 }
0x10fd   :  { %v2120_v7 = vpop.f32.mrf.mxu0 }
0x10fe   :  { %2256 = vtanh.f32 %v1460_v4  ;;  %v1888_v43 = vmul.f32 -1.442695, %v1460_v4 }
0x10ff   :  { %v1531_v41 = vpop.f32.mrf.mxu1 }
0x1100   :  { %v1538_v42 = vadd.f32 %v1536_v5, %v1531_v41 }
0x1101   :  { %v2131_v6 = vpop.f32.mrf.mxu1 }
0x1102   :  { %2258 = vtanh.f32 %v1538_v42  ;;  %v1889_v44 = vmul.f32 -1.442695, %v1538_v42 }
0x1103   :  { %2260 = vpow2.f32 %v1888_v43 }
0x1104   :  { %2262 = vpow2.f32 %v1889_v44 }
0x110b   :  { %v2257_v0 = vpop.eup %2256 }
0x110c   :  { %1548 = vrot.lane.b32.xlu0 %v2257_v0, %s2290_s30 }
0x110f   :  { %v2259_v8 = vpop.eup %2258 }
0x1110   :  { %1572 = vrot.lane.b32.xlu1 %v2259_v8, %s2290_s30  ;;  %v2261_v46 = vpop.eup %2260 }
0x1111   :  { %v1542_v47 = vadd.f32 1.0, %v2261_v46  ;;  %v2263_v48 = vpop.eup %2262 }
0x1112   :  { %v1566_v49 = vadd.f32 1.0, %v2263_v48 }
0x1113   :  { %2264 = vrcp.f32 %v1542_v47 }
0x1114   :  { %2266 = vrcp.f32 %v1566_v49 }
0x1120   :  { %v2265_v53 = vpop.eup %2264 }
0x1121   :  { %v2267_v56 = vpop.eup %2266  ;;  %v1546_v59 = vmul.f32 %v2265_v53, %v2673_v26  ;;  %v1761_v26 = vrot.slane %v1612_v23, 2 }
0x1122   :  { %v1570_v62 = vmul.f32 %v2267_v56, %v2677_v29 }
0x117e   :  { %v1549_v54 = vpop.permute.xlu0 %1548 }
0x117f   :  { %v1551_v55 = vmul.f32 %v2265_v53, %v1549_v54 }
0x1181   :  { %1553 = vrot.lane.b32.xlu0 %v1551_v55, %s2290_s30 }
0x1182   :  { %v1573_v57 = vpop.permute.xlu1 %1572 }
0x1183   :  { %v1575_v58 = vmul.f32 %v2267_v56, %v1573_v57 }
0x1185   :  { %1577 = vrot.lane.b32.xlu1 %v1575_v58, %s2290_s30 }
0x11f3   :  { %v1554_v60 = vpop.permute.xlu0 %1553 }
0x11f4   :  { %v1556_v61 = vadd.f32 %v1554_v60, %v1546_v59 }
0x11f6   :  { %2268 = vtanh.f32 %v1556_v61 }
0x11f7   :  { %v1578_v9 = vpop.permute.xlu1 %1577 }
0x11f8   :  { %v1580_v10 = vadd.f32 %v1578_v9, %v1570_v62 }
0x11fa   :  { %2270 = vtanh.f32 %v1580_v10 }
0x1203   :  { %v2269_v11 = vpop.eup %2268 }
0x1204   :  { %1559 = vrot.lane.b32.xlu0 %v2269_v11, %s2290_s30 }
0x1207   :  { %v2271_v12 = vpop.eup %2270 }
0x1208   :  { %1583 = vrot.lane.b32.xlu1 %v2271_v12, %s2290_s30 }
0x1276   :  { %v1560_v13 = vpop.permute.xlu0 %1559 }
0x1277   :  { %v1562_v14 = vmul.f32 %v2265_v53, %v1560_v13 }
0x1279   :  { %v1594_v15 = vrot.slane %v1562_v14, %v2416_v45 }
0x127a   :  { %v1584_v16 = vpop.permute.xlu1 %1583 }
0x127b   :  { %v1586_v17 = vmul.f32 %v2267_v56, %v1584_v16  ;;  %1595 = vrot.lane.b32.xlu0 %v1594_v15, %s2292_s4 }
0x127d   :  { %v1606_v18 = vrot.slane %v1586_v17, %v2416_v45 }
0x127f   :  { %1686 = vrot.lane.b32.xlu1 %v1606_v18, %s2292_s4 }
0x12ed   :  { %v2730_v19 = vpop.permute.xlu0 %1595 }
0x12ee   :  { %2141 = vmatmul.mubr.msk.f32.vlgmr.msra.gmra.mxu0 %vm25_vm2, %v2730_v19 }
0x12f1   :  { %v1687_v20 = vpop.permute.xlu1 %1686 }
0x12f2   :  { %2152 = vmatmul.mubr.msk.f32.vlgmr.msra.gmra.mxu1 %vm25_vm2, %v1687_v20 }
0x13ae   :  { %v1681_v24 = vpop.f32.mrf.mxu0 }
0x13af   :  { %v1685_v25 = vadd.f32 %v1892_v22, %v1681_v24 }
0x13b0   :  { %v2142_v27 = vpop.f32.mrf.mxu0 }
0x13b1   :  { %2272 = vtanh.f32 %v1685_v25  ;;  %v1895_v33 = vmul.f32 -1.442695, %v1685_v25 }
0x13b2   :  { %v1756_v28 = vpop.f32.mrf.mxu1 }
0x13b3   :  { %v1763_v29 = vadd.f32 %v1761_v26, %v1756_v28 }
0x13b4   :  { %v2153_v30 = vpop.f32.mrf.mxu1 }
0x13b5   :  { %2274 = vtanh.f32 %v1763_v29  ;;  %v1896_v34 = vmul.f32 -1.442695, %v1763_v29 }
0x13b6   :  { %2276 = vpow2.f32 %v1895_v33 }
0x13b7   :  { %2278 = vpow2.f32 %v1896_v34 }
0x13be   :  { %v2273_v31 = vpop.eup %2272 }
0x13bf   :  { %1773 = vrot.lane.b32.xlu0 %v2273_v31, %s2290_s30 }
0x13c2   :  { %v2275_v32 = vpop.eup %2274 }
0x13c3   :  { %1797 = vrot.lane.b32.xlu1 %v2275_v32, %s2290_s30  ;;  %v2277_v36 = vpop.eup %2276 }
0x13c4   :  { %v1767_v37 = vadd.f32 1.0, %v2277_v36  ;;  %v2279_v40 = vpop.eup %2278 }
0x13c5   :  { %v1791_v1 = vadd.f32 1.0, %v2279_v40 }
0x13c6   :  { %2280 = vrcp.f32 %v1767_v37 }
0x13c7   :  { %2282 = vrcp.f32 %v1791_v1 }
0x13d3   :  { %v2281_v2 = vpop.eup %2280 }
0x13d4   :  { %v2283_v5 = vpop.eup %2282  ;;  %v1771_v42 = vmul.f32 %v2281_v2, %v1556_v61 }
0x13d5   :  { %v1795_v8 = vmul.f32 %v2283_v5, %v1580_v10 }
0x1431   :  { %v1774_v3 = vpop.permute.xlu0 %1773 }
0x1432   :  { %v1776_v4 = vmul.f32 %v2281_v2, %v1774_v3 }
0x1434   :  { %1778 = vrot.lane.b32.xlu0 %v1776_v4, %s2290_s30 }
0x1435   :  { %v1798_v7 = vpop.permute.xlu1 %1797 }
0x1436   :  { %v1800_v41 = vmul.f32 %v2283_v5, %v1798_v7 }
0x1438   :  { %1802 = vrot.lane.b32.xlu1 %v1800_v41, %s2290_s30 }
0x14a6   :  { %v1779_v6 = vpop.permute.xlu0 %1778 }
0x14a7   :  { %v1781_v0 = vadd.f32 %v1779_v6, %v1771_v42 }
0x14a9   :  { %2284 = vtanh.f32 %v1781_v0 }
0x14aa   :  { %v1803_v43 = vpop.permute.xlu1 %1802 }
0x14ab   :  { %v1805_v44 = vadd.f32 %v1803_v43, %v1795_v8 }
0x14ad   :  { %2286 = vtanh.f32 %v1805_v44 }
0x14b6   :  { %v2285_v46 = vpop.eup %2284 }
0x14b7   :  { %1784 = vrot.lane.b32.xlu0 %v2285_v46, %s2290_s30 }
0x14ba   :  { %v2287_v47 = vpop.eup %2286 }
0x14bb   :  { %1808 = vrot.lane.b32.xlu1 %v2287_v47, %s2290_s30  ;;  %243 = vrot.lane.b32.xlu0 %v2421_v51, %s2293_s0 }
0x14bf   :  { %473 = vrot.lane.b32.xlu1 %v2474_v35, %s2293_s0  ;;  %702 = vrot.lane.b32.xlu0 %v2527_v21, %s2293_s0 }
0x14c3   :  { %931 = vrot.lane.b32.xlu1 %v2580_v63, %s2293_s0  ;;  %1157 = vrot.lane.b32.xlu0 %v2633_v50, %s2293_s0 }
0x14c7   :  { %1382 = vrot.lane.b32.xlu1 %v2685_v38, %s2293_s0  ;;  %1607 = vrot.lane.b32.xlu0 %v1606_v18, %s2293_s0 }
0x1529   :  { %v1785_v48 = vpop.permute.xlu0 %1784 }
0x152a   :  { %v1787_v49 = vmul.f32 %v2281_v2, %v1785_v48 }
0x152c   :  { %v1819_v53 = vrot.slane %v1787_v49, %v2416_v45 }
0x152d   :  { %v1809_v54 = vpop.permute.xlu1 %1808  ;;  %v244_v55 = vpop.permute.xlu0 %243 }
0x152e   :  { %v1811_v56 = vmul.f32 %v2283_v5, %v1809_v54  ;;  %1843 = vst.msk [vmem:[%s2810_s3 + $0xe] sm:$0x3] %vm247_vm3, %v244_v55  ;;  %1820 = vrot.lane.b32.xlu1 %v1819_v53, %s2292_s4 }
0x1530   :  { %v1831_v51 = vrot.slane %v1811_v56, %v2416_v45 }
0x1531   :  { %v474_v35 = vpop.permute.xlu1 %473  ;;  %v703_v21 = vpop.permute.xlu0 %702 }
0x1532   :  { %1851 = vst.msk [vmem:[%s2810_s3 + $0xc] sm:$0x3] %vm247_vm3, %v474_v35  ;;  %1859 = vst.msk [vmem:[%s2810_s3 + $0xa] sm:$0x3] %vm247_vm3, %v703_v21  ;;  %1832 = vrot.lane.b32.xlu0 %v1831_v51, %s2293_s0 }
0x1533   :  { %1890 = vst.msk [vmem:[%s2810_s3 + $0xc] sm:$0x3] %vm233_vm1, %v2730_v19  ;;  %1882 = vst.msk [vmem:[%s2810_s3 + $0xa] sm:$0x3] %vm233_vm1, %v2689_v39 }
0x1535   :  { %v932_v45 = vpop.permute.xlu1 %931  ;;  %v1158_v63 = vpop.permute.xlu0 %1157 }
0x1536   :  { %1867 = vst.msk [vmem:[%s2810_s3 + $0x8] sm:$0x3] %vm247_vm3, %v932_v45  ;;  %1875 = vst.msk [vmem:[%s2810_s3 + $0x6] sm:$0x3] %vm247_vm3, %v1158_v63 }
0x1537   :  { %1874 = vst.msk [vmem:[%s2810_s3 + $0x8] sm:$0x3] %vm233_vm1, %v2637_v52 }
0x1539   :  { %v1383_v50 = vpop.permute.xlu1 %1382  ;;  %v1608_v38 = vpop.permute.xlu0 %1607 }
0x153a   :  { %1883 = vst.msk [vmem:[%s2810_s3 + $0x4] sm:$0x3] %vm247_vm3, %v1383_v50  ;;  %1891 = vst.msk [vmem:[%s2810_s3 + $0x2] sm:$0x3] %vm247_vm3, %v1608_v38 }
0x15a0   :  { %v1821_v39 = vpop.permute.xlu1 %1820 }
0x15a1   :  { %1897 = vst.msk [vmem:[%s2810_s3 + $0xe] sm:$0x3] %vm233_vm1, %v1821_v39 }
0x15a4   :  { %v1833_v57 = vpop.permute.xlu0 %1832 }
0x15a5   :  { %1835 = vst.msk [vmem:[%s2810_s3] sm:$0x3] %vm247_vm3, %v1833_v57 }

</bundles_post_ra>
